<compile_context>
chip_gen: v7x
topology: tpu7x:2x2x1
jax: 0.10.0
libtpu: 0.0.40
codegen_flags: <defaults>
</compile_context>

<pallas_src>
import jax
import jax.numpy as jnp
from jax.experimental import pallas as pl
from jax.experimental.pallas import tpu as pltpu

EPS = 1e-5  # PyTorch BatchNorm1d default
NEG_BIG = -1e30  # masks padded logit lanes; exp(NEG_BIG - m) underflows to 0

# Parameter-slab row layout (all rows are 128 lanes wide, f32):
#   rows   0: 16   W1^T padded        -> real weights in cols   0:64
#   rows  16:144   W2^T padded        -> real weights in rows 0:64, cols 64:96
#   rows 144:272   W3^T padded        -> real weights in rows 64:96, cols 96:128
#   rows 272:400   W4^T padded        -> real weights in rows 96:128, cols 0:5
#   rows 400:408   per-layer vectors: g1, be1, g2, be2, g3, be3, b4(+lane mask), pad
_SLAB_ROWS = 408


def _forward_body(x_ref, p_ref):
    x = x_ref[...]                       # (n, 16)
    w1 = p_ref[0:16, :]                  # (16, 128)
    w2 = p_ref[16:144, :]                # (128, 128)
    w3 = p_ref[144:272, :]               # (128, 128)
    w4 = p_ref[272:400, :]               # (128, 128)
    vec = p_ref[400:408, :]              # (8, 128) packed per-layer vectors

    g1, be1 = vec[0:1, :], vec[1:2, :]   # gamma/beta live at their slab lane offsets
    g2, be2 = vec[2:3, :], vec[3:4, :]
    g3, be3 = vec[4:5, :], vec[5:6, :]
    b4 = vec[6:7, :]                     # lanes 0:5 = real bias, lanes 5:128 = -1e30

    def bn_relu(h, g, be):
        # Training-mode BatchNorm1d over the batch axis, biased variance,
        # two-pass statistics (robust), affine folded into one scale/shift.
        # Padded lanes: h == 0, g == 0, be == 0  ->  output stays exactly 0.
        mu = jnp.mean(h, axis=0, keepdims=True)
        d = h - mu
        var = jnp.mean(d * d, axis=0, keepdims=True)
        scale = g * jax.lax.rsqrt(var + EPS)   # (1, 128)
        shift = be - mu * scale                # (1, 128)
        return jnp.maximum(h * scale + shift, 0.0)

    # Linear biases b1/b2/b3 are omitted: they cancel exactly under training-mode BN.
    r1 = bn_relu(jnp.dot(x, w1, preferred_element_type=jnp.float32), g1, be1)   # lanes  0:64
    r2 = bn_relu(jnp.dot(r1, w2, preferred_element_type=jnp.float32), g2, be2)  # lanes 64:96
    r3 = bn_relu(jnp.dot(r2, w3, preferred_element_type=jnp.float32), g3, be3)  # lanes 96:128

    # Final Linear (bias kept) + max-stabilized softmax; padded lanes hold -1e30
    # so the row max / denominator only see the 5 real classes.
    logits = jnp.dot(r3, w4, preferred_element_type=jnp.float32) + b4           # (n, 128)
    m = jnp.max(logits, axis=1, keepdims=True)
    e = jnp.exp(logits - m)
    probs = e * pl.reciprocal(jnp.sum(e, axis=1, keepdims=True), approx=False)
    return probs, r1, r2, r3


def _three_layer_bn_kernel(x_ref, p_ref, probs_ref, acts_ref):
    probs, r1, r2, r3 = _forward_body(x_ref, p_ref)
    probs_ref[...] = probs[:, 0:5]
    # Disjoint-lane add -> one dense full-width (n, 128) store.
    acts_ref[...] = r1 + r2 + r3


def _three_layer_bn_probs_kernel(x_ref, p_ref, probs_ref):
    probs, _, _, _ = _forward_body(x_ref, p_ref)
    probs_ref[...] = probs[:, 0:5]


def three_layer_bn_forward(x, param_slab, *, return_activations=True):
    """x: (n, 16) f32. param_slab: (408, 128) f32 from _pack_params().

    Returns (probs, relu_1, relu_2, relu_3) like the PyTorch module, or just
    probs when return_activations=False (skips the dominant output writeback).
    """
    n = x.shape[0]
    vmem_params = pltpu.CompilerParams(vmem_limit_bytes=32 * 1024 * 1024)
    probs_shape = jax.ShapeDtypeStruct((n, 5), jnp.float32)

    if not return_activations:
        return pl.pallas_call(
            _three_layer_bn_probs_kernel,
            out_shape=probs_shape,
            in_specs=[pl.BlockSpec(memory_space=pltpu.VMEM)] * 2,
            out_specs=pl.BlockSpec(memory_space=pltpu.VMEM),
            compiler_params=vmem_params,
        )(x, param_slab)

    probs, acts = pl.pallas_call(
        _three_layer_bn_kernel,
        out_shape=(
            probs_shape,                                   # softmax probs
            jax.ShapeDtypeStruct((n, 128), jnp.float32),   # [relu_1 | relu_2 | relu_3]
        ),
        in_specs=[pl.BlockSpec(memory_space=pltpu.VMEM)] * 2,
        out_specs=(pl.BlockSpec(memory_space=pltpu.VMEM),
                   pl.BlockSpec(memory_space=pltpu.VMEM)),
        compiler_params=vmem_params,
    )(x, param_slab)
    return probs, acts[:, 0:64], acts[:, 64:96], acts[:, 96:128]


def _init_params(key):
    """PyTorch-style params (weights stored as (in, out) = weight.T, biases (1, F))."""
    dims = [(16, 64), (64, 32), (32, 32), (32, 5)]
    params = {}
    keys = jax.random.split(key, 2 * len(dims))
    for i, (fin, fout) in enumerate(dims):
        bound = 1.0 / jnp.sqrt(fin)
        params[f"w{i + 1}"] = jax.random.uniform(keys[2 * i], (fin, fout), jnp.float32, -bound, bound)
        params[f"b{i + 1}"] = jax.random.uniform(keys[2 * i + 1], (1, fout), jnp.float32, -bound, bound)
    for i, f in enumerate([64, 32, 32]):
        params[f"g{i + 1}"] = jnp.ones((1, f), jnp.float32)    # BN gamma default
        params[f"be{i + 1}"] = jnp.zeros((1, f), jnp.float32)  # BN beta default
    return params


def _pack_params(p):
    """One-time packing into a single (408, 128) slab; b1-b3 dropped (cancel under BN)."""
    slab = jnp.zeros((_SLAB_ROWS, 128), jnp.float32)
    slab = slab.at[0:16, 0:64].set(p["w1"])              # W1 -> lanes  0:64
    slab = slab.at[16:80, 64:96].set(p["w2"])            # W2 -> lanes 64:96 (rows 0:64 of its block)
    slab = slab.at[208:240, 96:128].set(p["w3"])         # W3 -> lanes 96:128 (rows 64:96 of its block)
    slab = slab.at[368:400, 0:5].set(p["w4"])            # W4 -> lanes 0:5   (rows 96:128 of its block)
    slab = slab.at[400, 0:64].set(p["g1"][0])
    slab = slab.at[401, 0:64].set(p["be1"][0])
    slab = slab.at[402, 64:96].set(p["g2"][0])
    slab = slab.at[403, 64:96].set(p["be2"][0])
    slab = slab.at[404, 96:128].set(p["g3"][0])
    slab = slab.at[405, 96:128].set(p["be3"][0])
    slab = slab.at[406, :].set(jnp.full((128,), NEG_BIG, jnp.float32))  # logit-lane mask
    slab = slab.at[406, 0:5].set(p["b4"][0])
    return slab


def _reference(x, p):
    """Pure-JAX reference faithful to the PyTorch module (with linear biases, two-pass var)."""
    def block(h, w, b, g, be):
        h = h @ w + b
        mu = h.mean(axis=0, keepdims=True)
        var = ((h - mu) ** 2).mean(axis=0, keepdims=True)
        return jnp.maximum(((h - mu) / jnp.sqrt(var + EPS)) * g + be, 0.0)

    r1 = block(x, p["w1"], p["b1"], p["g1"], p["be1"])
    r2 = block(r1, p["w2"], p["b2"], p["g2"], p["be2"])
    r3 = block(r2, p["w3"], p["b3"], p["g3"], p["be3"])
    logits = r3 @ p["w4"] + p["b4"]
    return jax.nn.softmax(logits, axis=1), r1, r2, r3


if __name__ == "__main__":
    key = jax.random.PRNGKey(0)
    k_x, k_p = jax.random.split(key)
    # batch=128: multiple of 8, fills the MXU row dimension and amortizes the
    # per-call overhead (per perf review); BN needs batch > 1. Input is ~8 KB.
    n = 128
    x = jax.random.normal(k_x, (n, 16), jnp.float32)
    params = _init_params(k_p)
    param_slab = jax.block_until_ready(_pack_params(params))  # packed once, off the call path

    probs, r1, r2, r3 = three_layer_bn_forward(x, param_slab)
    jax.block_until_ready((probs, r1, r2, r3))

    # Probs-only path (skips the activation writeback).
    probs_only = three_layer_bn_forward(x, param_slab, return_activations=False)
    jax.block_until_ready(probs_only)

    # Silent correctness checks against the PyTorch-faithful reference.
    ref = _reference(x, params)
    for got, want in zip((probs, r1, r2, r3), ref):
        assert jnp.allclose(got, want, atol=1e-4, rtol=1e-4)
    assert jnp.allclose(probs_only, probs, atol=1e-6, rtol=1e-6)
    assert jnp.allclose(jnp.sum(probs, axis=1), 1.0, atol=1e-5)

    print("KERNEL_OK")
</pallas_src>

<mosaic_0001>
module attributes {stable_mosaic.version = 11 : i64} {
  func.func @_three_layer_bn_kernel(%arg0: memref<128x16xf32, #tpu.memory_space<vmem>>, %arg1: memref<408x128xf32, #tpu.memory_space<vmem>>, %arg2: memref<128x5xf32, #tpu.memory_space<vmem>>, %arg3: memref<128x128xf32, #tpu.memory_space<vmem>>) attributes {dimension_semantics = [], scalar_prefetch = 0 : i64, scratch_operands = 0 : i64, tpu.core_type = #tpu.core_type<tc>} {
    %c0 = arith.constant 0 : index
    %c0_0 = arith.constant 0 : index
    %0 = vector.load %arg0[%c0, %c0_0] : memref<128x16xf32, #tpu.memory_space<vmem>>, vector<128x16xf32>
    %c0_1 = arith.constant 0 : index
    %c0_2 = arith.constant 0 : index
    %1 = vector.load %arg1[%c0_1, %c0_2] : memref<408x128xf32, #tpu.memory_space<vmem>>, vector<16x128xf32>
    %c16 = arith.constant 16 : index
    %c0_3 = arith.constant 0 : index
    %2 = vector.load %arg1[%c16, %c0_3] : memref<408x128xf32, #tpu.memory_space<vmem>>, vector<128x128xf32>
    %c144 = arith.constant 144 : index
    %c0_4 = arith.constant 0 : index
    %3 = vector.load %arg1[%c144, %c0_4] : memref<408x128xf32, #tpu.memory_space<vmem>>, vector<128x128xf32>
    %c272 = arith.constant 272 : index
    %c0_5 = arith.constant 0 : index
    %4 = vector.load %arg1[%c272, %c0_5] : memref<408x128xf32, #tpu.memory_space<vmem>>, vector<128x128xf32>
    %c400 = arith.constant 400 : index
    %c0_6 = arith.constant 0 : index
    %5 = vector.load %arg1[%c400, %c0_6] : memref<408x128xf32, #tpu.memory_space<vmem>>, vector<8x128xf32>
    %6 = vector.extract_strided_slice %5 {offsets = [0, 0], sizes = [1, 128], strides = [1, 1]} : vector<8x128xf32> to vector<1x128xf32>
    %7 = vector.extract_strided_slice %5 {offsets = [1, 0], sizes = [1, 128], strides = [1, 1]} : vector<8x128xf32> to vector<1x128xf32>
    %8 = vector.extract_strided_slice %5 {offsets = [2, 0], sizes = [1, 128], strides = [1, 1]} : vector<8x128xf32> to vector<1x128xf32>
    %9 = vector.extract_strided_slice %5 {offsets = [3, 0], sizes = [1, 128], strides = [1, 1]} : vector<8x128xf32> to vector<1x128xf32>
    %10 = vector.extract_strided_slice %5 {offsets = [4, 0], sizes = [1, 128], strides = [1, 1]} : vector<8x128xf32> to vector<1x128xf32>
    %11 = vector.extract_strided_slice %5 {offsets = [5, 0], sizes = [1, 128], strides = [1, 1]} : vector<8x128xf32> to vector<1x128xf32>
    %12 = vector.extract_strided_slice %5 {offsets = [6, 0], sizes = [1, 128], strides = [1, 1]} : vector<8x128xf32> to vector<1x128xf32>
    %cst = arith.constant dense<0.000000e+00> : vector<128x128xf32>
    %13 = tpu.matmul %0, %1, %cst {dimension_numbers = #tpu.dot_dimension_numbers<[1], [0], [0], [1], [0, 0, 1, 1], [], []>} : vector<128x16xf32>, vector<16x128xf32>, vector<128x128xf32> -> vector<128x128xf32>
    %cst_7 = arith.constant dense<0.000000e+00> : vector<128xf32>
    %14 = vector.multi_reduction <add>, %13, %cst_7 [0] : vector<128x128xf32> to vector<128xf32>
    %15 = vector.shape_cast %14 : vector<128xf32> to vector<1x128xf32>
    %cst_8 = arith.constant 1.280000e+02 : f32
    %16 = vector.broadcast %cst_8 : f32 to vector<1x128xf32>
    %17 = arith.divf %15, %16 : vector<1x128xf32>
    %18 = vector.broadcast %17 : vector<1x128xf32> to vector<128x128xf32>
    %19 = arith.subf %13, %18 : vector<128x128xf32>
    %20 = arith.mulf %19, %19 : vector<128x128xf32>
    %cst_9 = arith.constant dense<0.000000e+00> : vector<128xf32>
    %21 = vector.multi_reduction <add>, %20, %cst_9 [0] : vector<128x128xf32> to vector<128xf32>
    %22 = vector.shape_cast %21 : vector<128xf32> to vector<1x128xf32>
    %cst_10 = arith.constant 1.280000e+02 : f32
    %23 = vector.broadcast %cst_10 : f32 to vector<1x128xf32>
    %24 = arith.divf %22, %23 : vector<1x128xf32>
    %cst_11 = arith.constant 9.99999974E-6 : f32
    %25 = vector.broadcast %cst_11 : f32 to vector<1x128xf32>
    %26 = arith.addf %24, %25 : vector<1x128xf32>
    %27 = math.rsqrt %26 : vector<1x128xf32>
    %28 = arith.mulf %6, %27 : vector<1x128xf32>
    %29 = arith.mulf %17, %28 : vector<1x128xf32>
    %30 = arith.subf %7, %29 : vector<1x128xf32>
    %31 = vector.broadcast %28 : vector<1x128xf32> to vector<128x128xf32>
    %32 = arith.mulf %13, %31 : vector<128x128xf32>
    %33 = vector.broadcast %30 : vector<1x128xf32> to vector<128x128xf32>
    %34 = arith.addf %32, %33 : vector<128x128xf32>
    %cst_12 = arith.constant 0.000000e+00 : f32
    %35 = vector.broadcast %cst_12 : f32 to vector<128x128xf32>
    %36 = arith.maximumf %34, %35 : vector<128x128xf32>
    %cst_13 = arith.constant dense<0.000000e+00> : vector<128x128xf32>
    %37 = tpu.matmul %36, %2, %cst_13 {dimension_numbers = #tpu.dot_dimension_numbers<[1], [0], [0], [1], [0, 0, 1, 1], [], []>} : vector<128x128xf32>, vector<128x128xf32>, vector<128x128xf32> -> vector<128x128xf32>
    %cst_14 = arith.constant dense<0.000000e+00> : vector<128xf32>
    %38 = vector.multi_reduction <add>, %37, %cst_14 [0] : vector<128x128xf32> to vector<128xf32>
    %39 = vector.shape_cast %38 : vector<128xf32> to vector<1x128xf32>
    %cst_15 = arith.constant 1.280000e+02 : f32
    %40 = vector.broadcast %cst_15 : f32 to vector<1x128xf32>
    %41 = arith.divf %39, %40 : vector<1x128xf32>
    %42 = vector.broadcast %41 : vector<1x128xf32> to vector<128x128xf32>
    %43 = arith.subf %37, %42 : vector<128x128xf32>
    %44 = arith.mulf %43, %43 : vector<128x128xf32>
    %cst_16 = arith.constant dense<0.000000e+00> : vector<128xf32>
    %45 = vector.multi_reduction <add>, %44, %cst_16 [0] : vector<128x128xf32> to vector<128xf32>
    %46 = vector.shape_cast %45 : vector<128xf32> to vector<1x128xf32>
    %cst_17 = arith.constant 1.280000e+02 : f32
    %47 = vector.broadcast %cst_17 : f32 to vector<1x128xf32>
    %48 = arith.divf %46, %47 : vector<1x128xf32>
    %cst_18 = arith.constant 9.99999974E-6 : f32
    %49 = vector.broadcast %cst_18 : f32 to vector<1x128xf32>
    %50 = arith.addf %48, %49 : vector<1x128xf32>
    %51 = math.rsqrt %50 : vector<1x128xf32>
    %52 = arith.mulf %8, %51 : vector<1x128xf32>
    %53 = arith.mulf %41, %52 : vector<1x128xf32>
    %54 = arith.subf %9, %53 : vector<1x128xf32>
    %55 = vector.broadcast %52 : vector<1x128xf32> to vector<128x128xf32>
    %56 = arith.mulf %37, %55 : vector<128x128xf32>
    %57 = vector.broadcast %54 : vector<1x128xf32> to vector<128x128xf32>
    %58 = arith.addf %56, %57 : vector<128x128xf32>
    %cst_19 = arith.constant 0.000000e+00 : f32
    %59 = vector.broadcast %cst_19 : f32 to vector<128x128xf32>
    %60 = arith.maximumf %58, %59 : vector<128x128xf32>
    %cst_20 = arith.constant dense<0.000000e+00> : vector<128x128xf32>
    %61 = tpu.matmul %60, %3, %cst_20 {dimension_numbers = #tpu.dot_dimension_numbers<[1], [0], [0], [1], [0, 0, 1, 1], [], []>} : vector<128x128xf32>, vector<128x128xf32>, vector<128x128xf32> -> vector<128x128xf32>
    %cst_21 = arith.constant dense<0.000000e+00> : vector<128xf32>
    %62 = vector.multi_reduction <add>, %61, %cst_21 [0] : vector<128x128xf32> to vector<128xf32>
    %63 = vector.shape_cast %62 : vector<128xf32> to vector<1x128xf32>
    %cst_22 = arith.constant 1.280000e+02 : f32
    %64 = vector.broadcast %cst_22 : f32 to vector<1x128xf32>
    %65 = arith.divf %63, %64 : vector<1x128xf32>
    %66 = vector.broadcast %65 : vector<1x128xf32> to vector<128x128xf32>
    %67 = arith.subf %61, %66 : vector<128x128xf32>
    %68 = arith.mulf %67, %67 : vector<128x128xf32>
    %cst_23 = arith.constant dense<0.000000e+00> : vector<128xf32>
    %69 = vector.multi_reduction <add>, %68, %cst_23 [0] : vector<128x128xf32> to vector<128xf32>
    %70 = vector.shape_cast %69 : vector<128xf32> to vector<1x128xf32>
    %cst_24 = arith.constant 1.280000e+02 : f32
    %71 = vector.broadcast %cst_24 : f32 to vector<1x128xf32>
    %72 = arith.divf %70, %71 : vector<1x128xf32>
    %cst_25 = arith.constant 9.99999974E-6 : f32
    %73 = vector.broadcast %cst_25 : f32 to vector<1x128xf32>
    %74 = arith.addf %72, %73 : vector<1x128xf32>
    %75 = math.rsqrt %74 : vector<1x128xf32>
    %76 = arith.mulf %10, %75 : vector<1x128xf32>
    %77 = arith.mulf %65, %76 : vector<1x128xf32>
    %78 = arith.subf %11, %77 : vector<1x128xf32>
    %79 = vector.broadcast %76 : vector<1x128xf32> to vector<128x128xf32>
    %80 = arith.mulf %61, %79 : vector<128x128xf32>
    %81 = vector.broadcast %78 : vector<1x128xf32> to vector<128x128xf32>
    %82 = arith.addf %80, %81 : vector<128x128xf32>
    %cst_26 = arith.constant 0.000000e+00 : f32
    %83 = vector.broadcast %cst_26 : f32 to vector<128x128xf32>
    %84 = arith.maximumf %82, %83 : vector<128x128xf32>
    %cst_27 = arith.constant dense<0.000000e+00> : vector<128x128xf32>
    %85 = tpu.matmul %84, %4, %cst_27 {dimension_numbers = #tpu.dot_dimension_numbers<[1], [0], [0], [1], [0, 0, 1, 1], [], []>} : vector<128x128xf32>, vector<128x128xf32>, vector<128x128xf32> -> vector<128x128xf32>
    %86 = vector.broadcast %12 : vector<1x128xf32> to vector<128x128xf32>
    %87 = arith.addf %85, %86 : vector<128x128xf32>
    %cst_28 = arith.constant dense<0xFF800000> : vector<128xf32>
    %88 = vector.multi_reduction <maximumf>, %87, %cst_28 [1] : vector<128x128xf32> to vector<128xf32>
    %89 = vector.shape_cast %88 : vector<128xf32> to vector<128x1xf32>
    %90 = vector.broadcast %89 : vector<128x1xf32> to vector<128x128xf32>
    %91 = arith.subf %87, %90 : vector<128x128xf32>
    %92 = math.exp %91 : vector<128x128xf32>
    %cst_29 = arith.constant dense<0.000000e+00> : vector<128xf32>
    %93 = vector.multi_reduction <add>, %92, %cst_29 [1] : vector<128x128xf32> to vector<128xf32>
    %94 = vector.shape_cast %93 : vector<128xf32> to vector<128x1xf32>
    %95 = tpu.reciprocal %94 : vector<128x1xf32> -> vector<128x1xf32>
    %96 = vector.broadcast %95 : vector<128x1xf32> to vector<128x128xf32>
    %97 = arith.mulf %92, %96 : vector<128x128xf32>
    %98 = vector.extract_strided_slice %97 {offsets = [0, 0], sizes = [128, 5], strides = [1, 1]} : vector<128x128xf32> to vector<128x5xf32>
    %c0_30 = arith.constant 0 : index
    %c0_31 = arith.constant 0 : index
    %99 = vector.load %arg2[%c0_30, %c0_31] : memref<128x5xf32, #tpu.memory_space<vmem>>, vector<128x5xf32>
    tpu.vector_store %arg2[%c0_30, %c0_31], %98 {strides = array<i32>} : memref<128x5xf32, #tpu.memory_space<vmem>>, vector<128x5xf32>,
    %100 = arith.addf %36, %60 : vector<128x128xf32>
    %101 = arith.addf %100, %84 : vector<128x128xf32>
    %c0_32 = arith.constant 0 : index
    %c0_33 = arith.constant 0 : index
    %102 = vector.load %arg3[%c0_32, %c0_33] : memref<128x128xf32, #tpu.memory_space<vmem>>, vector<128x128xf32>
    tpu.vector_store %arg3[%c0_32, %c0_33], %101 {strides = array<i32>} : memref<128x128xf32, #tpu.memory_space<vmem>>, vector<128x128xf32>,
    return
  }
}

</mosaic_0001>

<bundles_post_ra>
// kernel: tpu_custom_call.1
= control target key start
LH: loop header
LB: loop body
LE: loop exit
PB: predicated region body
PF: predicated region fallthrough
CT: control target
= control target key end

     0   :  { %9 = vsyncpa [#allocation3], 0  ;;  %s2763_s0 = inlined_call_operand.vmem [shape: f32[128,16], index: 0, kind: input, shape index: {}]   ;;  %s2764_s1 = inlined_call_operand.hbm [shape: f32[408,128], index: 1, kind: input, shape index: {}]   ;;  %s2765_s2 = inlined_call_operand.vmem [shape: f32[128,5], index: 2, kind: output, shape index: {0}]   ;;  %s2766_s3 = inlined_call_operand.hbm [shape: f32[128,128], index: 3, kind: output, shape index: {1}]  }
   0x1   :  { %10 = vsyncpa [#allocation4], 0  ;;  %s1944_s12 = smov [#allocation2]   ;;  %s1896_s16 = scalar_lea.hbm %s2764_s1, 6528 }
   0x2   :  { %s18_s13 = sshll.u32 %s1944_s12, 4  ;;  %p1897_p0 = scmp.ne.s32.totalorder %s2764_s1, %s1896_s16  ;;  %s19_s13 = int_to_ptr.vmem [resolvable:$true] %s18_s13 }
   0x3   :  { %p1900_p1 = scmp.lt.u32.totalorder %s1896_s16, %s2764_s1 }
   0x5   :  { %p1902_p2 = pnand %p1900_p1, %p1897_p0 }
   0x7   :  { %1905 = shalt.err (!%p1902_p2)
}
   0x8   :  { %s1906_s21 = scalar_lea.vmem %s19_s13, 6528  ;;  %p1911_p4 = scmp.lt.s32.totalorder %s19_s13, %s19_s13 }
   0x9   :  { %p1907_p3 = scmp.ne.s32.totalorder %s19_s13, %s1906_s21  ;;  %p1912_p5 = scmp.lt.s32.totalorder %s1906_s21, %s1906_s21 }
   0xb   :  { %p1913_p6 = por %p1912_p5, %p1911_p4 }
   0xd   :  { %p1914_p7 = pnand %p1913_p6, %p1907_p3 }
   0xf   :  { %1917 = shalt.err (!%p1914_p7)
}
  0x10   :  { %s1945_s22 = smov 128   ;;  %s1946_s23 = smov 8  }
  0x11   :  { %24 = dma.hbm_to_vmem [thread:$0]  %s2764_s1, 6528, %s19_s13, [#allocation3], %s1945_s22, %s1945_s22, %s1946_s23  }
  0x12   :  { %1940 = dma.done.wait [#allocation3], 6528  }
  0x13   :  { %1941 = vsyncadd [#allocation3], 4294960768  ;;  %vm95_vm0 = vcmask 130048   ;;  %v44_v0 = vld [vmem:[#allocation2] sm:$0xff]  ;;  %v45_v1 = vld [vmem:[#allocation2 + $0x8] sm:$0xff] }
  0x14   :  { %v28_v2 = vld [vmem:[%s2763_s0] sm:$0xff]  ;;  %v1705_v3 = vpack.c.bf16 %v45_v1, %v44_v0  ;;  %v29_v4 = vld [vmem:[%s2763_s0 + $0x8] sm:$0xff]  ;;  %v30_v5 = vld [vmem:[%s2763_s0 + $0x10] sm:$0xff] }
  0x15   :  { %1513 = vmatprep.mubr.msk.f32.mxu0 %vm95_vm0, %v28_v2  ;;  %v31_v6 = vld [vmem:[%s2763_s0 + $0x18] sm:$0xff]  ;;  %v32_v7 = vld [vmem:[%s2763_s0 + $0x20] sm:$0xff]  ;;  %v33_v8 = vld [vmem:[%s2763_s0 + $0x28] sm:$0xff] }
  0x16   :  { %1706 = vmatprep.subr.bf16.mxu0 %v1705_v3  ;;  %v34_v9 = vld [vmem:[%s2763_s0 + $0x30] sm:$0xff]  ;;  %v35_v10 = vld [vmem:[%s2763_s0 + $0x38] sm:$0xff]  ;;  %v36_v11 = vld [vmem:[%s2763_s0 + $0x40] sm:$0xff] }
  0x17   :  { %1708 = vmatpush3.bf16.msra.mxu0 %v1705_v3  ;;  %v37_v12 = vld [vmem:[%s2763_s0 + $0x48] sm:$0xff]  ;;  %v38_v13 = vld [vmem:[%s2763_s0 + $0x50] sm:$0xff]  ;;  %v39_v14 = vld [vmem:[%s2763_s0 + $0x58] sm:$0xff] }
  0x18   :  { %v40_v15 = vld [vmem:[%s2763_s0 + $0x60] sm:$0xff]  ;;  %v41_v16 = vld [vmem:[%s2763_s0 + $0x68] sm:$0xff]  ;;  %v42_v17 = vld [vmem:[%s2763_s0 + $0x70] sm:$0xff] }
  0x19   :  { %v43_v18 = vld [vmem:[%s2763_s0 + $0x78] sm:$0xff]  ;;  %v46_v19 = vld [vmem:[#allocation2 + $0x10] sm:$0xff]  ;;  %v48_v22 = vld [vmem:[#allocation2 + $0x20] sm:$0xff]  ;;  %s1947_s0 = smov [#allocation5]  }
  0x1a   :  { %1514 = vmatmul.mubr.msk.f32.vlgmr.msra.gmra.mrb[0].mxu0 %vm95_vm0, %v29_v4  ;;  %v47_v20 = vld [vmem:[#allocation2 + $0x18] sm:$0xff]  ;;  %v49_v23 = vld [vmem:[#allocation2 + $0x28] sm:$0xff]  ;;  %v50_v25 = vld [vmem:[#allocation2 + $0x30] sm:$0xff]  ;;  %s1365_s4 = sshll.u32 %s1947_s0, 4  ;;  %s1366_s4 = int_to_ptr.vmem [resolvable:$true] %s1365_s4 }
  0x1b   :  { %1516 = vmatprep.mubr.msk.f32.mxu0 %vm95_vm0, %v30_v5  ;;  %v1709_v21 = vpack.c.bf16 %v47_v20, %v46_v19  ;;  %v1713_v24 = vpack.c.bf16 %v49_v23, %v48_v22  ;;  %v51_v26 = vld [vmem:[#allocation2 + $0x38] sm:$0xff]  ;;  %v52_v28 = vld [vmem:[#allocation2 + $0x40] sm:$0xff]  ;;  %v53_v29 = vld [vmem:[#allocation2 + $0x48] sm:$0xff]  ;;  %s1918_s5 = scalar_lea.vmem %s1366_s4, 2048  ;;  %p1923_p9 = scmp.lt.s32.totalorder %s1366_s4, %s1366_s4 }
  0x1c   :  { %v1717_v27 = vpack.c.bf16 %v51_v26, %v50_v25  ;;  %v1721_v30 = vpack.c.bf16 %v53_v29, %v52_v28  ;;  %v54_v31 = vld [vmem:[#allocation2 + $0x50] sm:$0xff]  ;;  %v55_v32 = vld [vmem:[#allocation2 + $0x58] sm:$0xff]  ;;  %v56_v34 = vld [vmem:[#allocation2 + $0x60] sm:$0xff]  ;;  %p1919_p8 = scmp.ne.s32.totalorder %s1366_s4, %s1918_s5  ;;  %p1924_p10 = scmp.lt.s32.totalorder %s1918_s5, %s1918_s5 }
  0x1d   :  { %1710 = vmatprep.subr.bf16.mxu1 %v1709_v21  ;;  %v1725_v33 = vpack.c.bf16 %v55_v32, %v54_v31  ;;  %v57_v35 = vld [vmem:[#allocation2 + $0x68] sm:$0xff]  ;;  %v58_v37 = vld [vmem:[#allocation2 + $0x70] sm:$0xff]  ;;  %v59_v38 = vld [vmem:[#allocation2 + $0x78] sm:$0xff] }
  0x1e   :  { %1517 = vmatmul.mubr.msk.f32.gmra.mrb[2].mxu0 %vm95_vm0, %v31_v6  ;;  %1712 = vmatpush3.bf16.msra.mxu1 %v1709_v21  ;;  %v1729_v36 = vpack.c.bf16 %v57_v35, %v56_v34  ;;  %v1733_v39 = vpack.c.bf16 %v59_v38, %v58_v37  ;;  %v60_v40 = vld [vmem:[#allocation2 + $0x80] sm:$0xff]  ;;  %v61_v41 = vld [vmem:[#allocation2 + $0x88] sm:$0xff]  ;;  %p1925_p11 = por %p1924_p10, %p1923_p9 }
  0x1f   :  { %1519 = vmatprep.mubr.msk.f32.mxu0 %vm95_vm0, %v32_v7  ;;  %1714 = vmatprep.subr.bf16.mxu1 %v1713_v24  ;;  %v1737_v42 = vpack.c.bf16 %v61_v41, %v60_v40 }
  0x20   :  { %p1926_p12 = pnand %p1925_p11, %p1919_p8 }
  0x22   :  { %1520 = vmatmul.mubr.msk.f32.gmra.mrb[4].mxu0 %vm95_vm0, %v33_v8  ;;  %1716 = vmatpush3.bf16.msra.mxu1 %v1713_v24 }
  0x23   :  { %1522 = vmatprep.mubr.msk.f32.mxu0 %vm95_vm0, %v34_v9  ;;  %1718 = vmatprep.subr.bf16.mxu1 %v1717_v27 }
  0x26   :  { %1523 = vmatmul.mubr.msk.f32.gmra.mrb[6].mxu0 %vm95_vm0, %v35_v10  ;;  %1720 = vmatpush3.bf16.msra.mxu1 %v1717_v27 }
  0x27   :  { %1525 = vmatprep.mubr.msk.f32.mxu0 %vm95_vm0, %v36_v11  ;;  %1722 = vmatprep.subr.bf16.mxu1 %v1721_v30 }
  0x2a   :  { %1526 = vmatmul.mubr.msk.f32.gmra.mrb[8].mxu0 %vm95_vm0, %v37_v12  ;;  %1724 = vmatpush3.bf16.msra.mxu1 %v1721_v30 }
  0x2b   :  { %1528 = vmatprep.mubr.msk.f32.mxu0 %vm95_vm0, %v38_v13  ;;  %1726 = vmatprep.subr.bf16.mxu1 %v1725_v33 }
  0x2e   :  { %1529 = vmatmul.mubr.msk.f32.gmra.mrb[10].mxu0 %vm95_vm0, %v39_v14  ;;  %1728 = vmatpush3.bf16.msra.mxu1 %v1725_v33 }
  0x2f   :  { %1531 = vmatprep.mubr.msk.f32.mxu0 %vm95_vm0, %v40_v15  ;;  %1730 = vmatprep.subr.bf16.mxu1 %v1729_v36 }
  0x32   :  { %1532 = vmatmul.mubr.msk.f32.gmra.mrb[12].mxu0 %vm95_vm0, %v41_v16  ;;  %1732 = vmatpush3.bf16.msra.mxu1 %v1729_v36 }
  0x33   :  { %1534 = vmatprep.mubr.msk.f32.mxu0 %vm95_vm0, %v42_v17  ;;  %1734 = vmatprep.subr.bf16.mxu1 %v1733_v39 }
  0x36   :  { %1535 = vmatmul.mubr.msk.f32.gmra.mrb[14].mxu0 %vm95_vm0, %v43_v18  ;;  %1736 = vmatpush3.bf16.msra.mxu1 %v1733_v39 }
  0x37   :  { %1738 = vmatprep.subr.bf16.mxu1 %v1737_v42 }
  0x3a   :  { %1740 = vmatpush3.bf16.msra.mxu1 %v1737_v42 }
  0xed   :  { %v2047_v43 = vpop.f32.mrb[0].mxu0 }
  0xee   :  { %v2049_v44 = vpop.f32.mrb[1].mxu0 }
  0xef   :  { %v289_v45 = vadd.f32 %v2047_v43, %v2049_v44 }
  0xf1   :  { %v2053_v46 = vpop.f32.mrb[2].mxu0 }
  0xf2   :  { %v2055_v47 = vpop.f32.mrb[3].mxu0 }
  0xf3   :  { %v290_v48 = vadd.f32 %v289_v45, %v2055_v47 }
  0xf5   :  { %v2058_v49 = vpop.f32.mrb[4].mxu0  ;;  %v291_v50 = vadd.f32 %v2053_v46, %v290_v48 }
  0xf6   :  { %v2061_v51 = vpop.f32.mrb[5].mxu0 }
  0xf7   :  { %v292_v52 = vadd.f32 %v291_v50, %v2061_v51 }
  0xf9   :  { %v2064_v53 = vpop.f32.mrb[6].mxu0  ;;  %v293_v54 = vadd.f32 %v2058_v49, %v292_v52 }
  0xfa   :  { %v2067_v55 = vpop.f32.mrb[7].mxu0 }
  0xfb   :  { %v294_v56 = vadd.f32 %v293_v54, %v2067_v55 }
  0xfd   :  { %v2070_v57 = vpop.f32.mrb[8].mxu0  ;;  %v295_v58 = vadd.f32 %v2064_v53, %v294_v56 }
  0xfe   :  { %v2073_v59 = vpop.f32.mrb[9].mxu0 }
  0xff   :  { %v296_v60 = vadd.f32 %v295_v58, %v2073_v59 }
 0x101   :  { %v2076_v61 = vpop.f32.mrb[10].mxu0  ;;  %v297_v62 = vadd.f32 %v2070_v57, %v296_v60 }
 0x102   :  { %v2079_v63 = vpop.f32.mrb[11].mxu0 }
 0x103   :  { %v298_v0 = vadd.f32 %v297_v62, %v2079_v63 }
 0x105   :  { %v2082_v1 = vpop.f32.mrb[12].mxu0  ;;  %v299_v2 = vadd.f32 %v2076_v61, %v298_v0 }
 0x106   :  { %v2085_v3 = vpop.f32.mrb[13].mxu0 }
 0x107   :  { %v300_v4 = vadd.f32 %v299_v2, %v2085_v3 }
 0x109   :  { %v2088_v5 = vpop.f32.mrb[14].mxu0  ;;  %v301_v6 = vadd.f32 %v2082_v1, %v300_v4 }
 0x10a   :  { %v2091_v7 = vpop.f32.mrb[15].mxu0 }
 0x10b   :  { %v302_v8 = vadd.f32 %v301_v6, %v2091_v7 }
 0x10d   :  { %v303_v9 = vadd.f32 %v2088_v5, %v302_v8 }
 0x10f   :  { %v304_v10 = vrot.slane %v303_v9, 4 }
 0x111   :  { %v305_v11 = vadd.f32 %v304_v10, %v303_v9 }
 0x113   :  { %v306_v12 = vrot.slane %v305_v11, 2 }
 0x115   :  { %v307_v13 = vadd.f32 %v306_v12, %v305_v11 }
 0x117   :  { %v308_v14 = vrot.slane %v307_v13, 1 }
 0x119   :  { %v309_v15 = vadd.f32 %v308_v14, %v307_v13 }
 0x11b   :  { %v2095_v16 = vmul.f32 0.0078125, %v309_v15 }
 0x11d   :  { %v312_v17 = vsub.f32 %v2049_v44, %v2095_v16  ;;  %v313_v18 = vsub.f32 %v2047_v43, %v2095_v16  ;;  %v314_v19 = vsub.f32 %v2055_v47, %v2095_v16  ;;  %v315_v20 = vsub.f32 %v2053_v46, %v2095_v16 }
 0x11e   :  { %v316_v21 = vsub.f32 %v2061_v51, %v2095_v16  ;;  %v317_v22 = vsub.f32 %v2058_v49, %v2095_v16  ;;  %v318_v23 = vsub.f32 %v2067_v55, %v2095_v16  ;;  %v319_v24 = vsub.f32 %v2064_v53, %v2095_v16 }
 0x11f   :  { %v320_v25 = vsub.f32 %v2073_v59, %v2095_v16  ;;  %v321_v26 = vsub.f32 %v2070_v57, %v2095_v16  ;;  %v322_v27 = vsub.f32 %v2079_v63, %v2095_v16  ;;  %v323_v28 = vsub.f32 %v2076_v61, %v2095_v16 }
 0x120   :  { %v324_v29 = vsub.f32 %v2085_v3, %v2095_v16  ;;  %v325_v30 = vsub.f32 %v2082_v1, %v2095_v16  ;;  %v326_v31 = vsub.f32 %v2091_v7, %v2095_v16  ;;  %v327_v32 = vsub.f32 %v2088_v5, %v2095_v16 }
 0x121   :  { %v328_v33 = vmul.f32 %v312_v17, %v312_v17  ;;  %v329_v34 = vmul.f32 %v313_v18, %v313_v18  ;;  %v330_v35 = vmul.f32 %v314_v19, %v314_v19  ;;  %v331_v37 = vmul.f32 %v315_v20, %v315_v20 }
 0x122   :  { %v332_v39 = vmul.f32 %v316_v21, %v316_v21  ;;  %v333_v41 = vmul.f32 %v317_v22, %v317_v22  ;;  %v334_v45 = vmul.f32 %v318_v23, %v318_v23  ;;  %v335_v50 = vmul.f32 %v319_v24, %v319_v24 }
 0x123   :  { %v344_v36 = vadd.f32 %v329_v34, %v328_v33  ;;  %v336_v54 = vmul.f32 %v320_v25, %v320_v25  ;;  %v337_v58 = vmul.f32 %v321_v26, %v321_v26  ;;  %v338_v62 = vmul.f32 %v322_v27, %v322_v27  ;;  %v2131_v27 = vld [vmem:[#allocation2 + $0x190] sm:$0xff] }
 0x124   :  { %v339_v2 = vmul.f32 %v323_v28, %v323_v28  ;;  %v340_v6 = vmul.f32 %v324_v29, %v324_v29  ;;  %v341_v9 = vmul.f32 %v325_v30, %v325_v30  ;;  %v342_v11 = vmul.f32 %v326_v31, %v326_v31 }
 0x125   :  { %v345_v38 = vadd.f32 %v344_v36, %v330_v35  ;;  %v343_v13 = vmul.f32 %v327_v32, %v327_v32  ;;  %v374_v25 = vlaneseq }
 0x127   :  { %v346_v40 = vadd.f32 %v345_v38, %v331_v37  ;;  %v2129_v26 = vshrl.u32 %v374_v25, 7  ;;  %v65_v25 = vld [vmem:[#allocation2 + $0xa8] sm:$0xff] }
 0x129   :  { %v347_v42 = vadd.f32 %v346_v40, %v332_v39  ;;  %v376_v28 = vsub.s32 0, %v2129_v26  ;;  %v396_v33 = vsub.s32 1, %v2129_v26 }
 0x12b   :  { %v348_v48 = vadd.f32 %v347_v42, %v333_v41 }
 0x12d   :  { %v349_v52 = vadd.f32 %v348_v48, %v334_v45 }
 0x12f   :  { %v350_v56 = vadd.f32 %v349_v52, %v335_v50 }
 0x131   :  { %v351_v60 = vadd.f32 %v350_v56, %v336_v54 }
 0x133   :  { %v352_v0 = vadd.f32 %v351_v60, %v337_v58 }
 0x135   :  { %v353_v4 = vadd.f32 %v352_v0, %v338_v62 }
 0x137   :  { %v354_v8 = vadd.f32 %v353_v4, %v339_v2 }
 0x139   :  { %v355_v10 = vadd.f32 %v354_v8, %v340_v6 }
 0x13b   :  { %v356_v12 = vadd.f32 %v355_v10, %v341_v9 }
 0x13d   :  { %v357_v14 = vadd.f32 %v356_v12, %v342_v11 }
 0x13f   :  { %v358_v15 = vadd.f32 %v357_v14, %v343_v13 }
 0x141   :  { %v359_v17 = vrot.slane %v358_v15, 4 }
 0x143   :  { %v360_v18 = vadd.f32 %v359_v17, %v358_v15 }
 0x145   :  { %v361_v19 = vrot.slane %v360_v18, 2 }
 0x147   :  { %v362_v20 = vadd.f32 %v361_v19, %v360_v18 }
 0x149   :  { %v363_v21 = vrot.slane %v362_v20, 1 }
 0x14b   :  { %v364_v22 = vadd.f32 %v363_v21, %v362_v20  ;;  %v62_v21 = vld [vmem:[#allocation2 + $0x90] sm:$0xff] }
 0x14d   :  { %v365_v23 = vmul.f32 0.0078125, %v364_v22  ;;  %v63_v22 = vld [vmem:[#allocation2 + $0x98] sm:$0xff] }
 0x14f   :  { %v366_v24 = vadd.f32 1e-05, %v365_v23  ;;  %v1741_v23 = vpack.c.bf16 %v63_v22, %v62_v21 }
 0x151   :  { %1825 = vrsqrt.f32 %v366_v24  ;;  %1742 = vmatprep.subr.bf16.mxu0 %v1741_v23  ;;  %v64_v24 = vld [vmem:[#allocation2 + $0xa0] sm:$0xff] }
 0x152   :  { %1744 = vmatpush3.bf16.msra.mxu0 %v1741_v23 }
 0x15b   :  { %v1826_v29 = vpop.eup %1825 }
 0x15c   :  { %v368_v30 = vmul.f32 %v1826_v29, %v2131_v27  ;;  %v66_v29 = vld [vmem:[#allocation2 + $0xb0] sm:$0xff] }
 0x15e   :  { %v369_v31 = vmul.f32 %v368_v30, %v2095_v16  ;;  %v377_v32 = vrot.slane %v368_v30, %v376_v28  ;;  %v1745_v28 = vpack.c.bf16 %v65_v25, %v64_v24  ;;  %v67_v30 = vld [vmem:[#allocation2 + $0xb8] sm:$0xff] }
 0x160   :  { %v371_v34 = vrot.slane %v369_v31, 7  ;;  %v392_v35 = vmul.f32 %v377_v32, %v2091_v7  ;;  %v378_v36 = vmul.f32 %v377_v32, %v2049_v44  ;;  %v379_v37 = vmul.f32 %v2047_v43, %v377_v32  ;;  %1746 = vmatprep.subr.bf16.mxu0 %v1745_v28 }
 0x161   :  { %v380_v38 = vmul.f32 %v377_v32, %v2055_v47  ;;  %v381_v39 = vmul.f32 %v2053_v46, %v377_v32  ;;  %v382_v40 = vmul.f32 %v377_v32, %v2061_v51  ;;  %v383_v41 = vmul.f32 %v2058_v49, %v377_v32  ;;  %1748 = vmatpush3.bf16.msra.mxu0 %v1745_v28 }
 0x162   :  { %v373_v16 = vsub.f32 %v2131_v27, %v371_v34  ;;  %v384_v42 = vmul.f32 %v377_v32, %v2067_v55  ;;  %v385_v45 = vmul.f32 %v2064_v53, %v377_v32  ;;  %v386_v7 = vmul.f32 %v377_v32, %v2073_v59 }
 0x163   :  { %v387_v44 = vmul.f32 %v2070_v57, %v377_v32  ;;  %v388_v43 = vmul.f32 %v377_v32, %v2079_v63  ;;  %v389_v47 = vmul.f32 %v2076_v61, %v377_v32  ;;  %v390_v46 = vmul.f32 %v377_v32, %v2085_v3 }
 0x164   :  { %v397_v48 = vrot.slane %v373_v16, %v396_v33  ;;  %v391_v51 = vmul.f32 %v2082_v1, %v377_v32  ;;  %v393_v49 = vmul.f32 %v2088_v5, %v377_v32  ;;  %v1749_v31 = vpack.c.bf16 %v67_v30, %v66_v29  ;;  %v68_v32 = vld [vmem:[#allocation2 + $0xc0] sm:$0xff]  ;;  %v69_v33 = vld [vmem:[#allocation2 + $0xc8] sm:$0xff]  ;;  %v75_v16 = vld [vmem:[#allocation2 + $0xf8] sm:$0xff] }
 0x165   :  { %v1753_v34 = vpack.c.bf16 %v69_v33, %v68_v32 }
 0x166   :  { %v2154_v50 = vadd.f32 %v397_v48, %v378_v36  ;;  %v2156_v55 = vadd.f32 %v397_v48, %v379_v37  ;;  %v2158_v53 = vadd.f32 %v397_v48, %v380_v38  ;;  %v2160_v59 = vadd.f32 %v397_v48, %v381_v39  ;;  %1750 = vmatprep.subr.bf16.mxu0 %v1749_v31  ;;  %v71_v36 = vld [vmem:[#allocation2 + $0xd8] sm:$0xff]  ;;  %v72_v38 = vld [vmem:[#allocation2 + $0xe0] sm:$0xff]  ;;  %v73_v39 = vld [vmem:[#allocation2 + $0xe8] sm:$0xff] }
 0x167   :  { %v2162_v57 = vadd.f32 %v397_v48, %v382_v40  ;;  %v2164_v63 = vadd.f32 %v397_v48, %v383_v41  ;;  %v2166_v61 = vadd.f32 %v397_v48, %v384_v42  ;;  %v2168_v3 = vadd.f32 %v397_v48, %v385_v45  ;;  %1752 = vmatpush3.bf16.msra.mxu0 %v1749_v31  ;;  %v74_v41 = vld [vmem:[#allocation2 + $0xf0] sm:$0xff]  ;;  %v76_v45 = vld [vmem:[#allocation2 + $0x100] sm:$0xff] }
 0x168   :  { %v2782_v1 = vmax.f32 %v2154_v50, 0.0  ;;  %v2781_v5 = vmax.f32 %v2156_v55, 0.0  ;;  %v2780_v52 = vmax.f32 %v2158_v53, 0.0  ;;  %v2175_v54 = vadd.f32 %v397_v48, %v386_v7  ;;  %1754 = vmatprep.subr.bf16.mxu0 %v1753_v34  ;;  %v77_v7 = vld [vmem:[#allocation2 + $0x108] sm:$0xff] }
 0x169   :  { %v2177_v56 = vadd.f32 %v397_v48, %v387_v44  ;;  %v2179_v58 = vadd.f32 %v397_v48, %v388_v43  ;;  %v2181_v60 = vadd.f32 %v397_v48, %v389_v47  ;;  %v2185_v62 = vadd.f32 %v397_v48, %v390_v46 }
 0x16a   :  { %1569 = vmatprep.mubr.f32.mxu1 %v2782_v1  ;;  %v2187_v0 = vadd.f32 %v397_v48, %v391_v51  ;;  %v2189_v2 = vadd.f32 %v397_v48, %v392_v35  ;;  %v2191_v4 = vadd.f32 %v397_v48, %v393_v49  ;;  %v2779_v6 = vmax.f32 %v2160_v59, 0.0  ;;  %v70_v35 = vld [vmem:[#allocation2 + $0xd0] sm:$0xff] }
 0x16b   :  { %2822 = vst [vmem:[#allocation8_spill] sm:$0xff] %v2177_v56  ;;  %2823 = vst [vmem:[#allocation9_spill] sm:$0xff] %v2179_v58  ;;  %1570 = vmatmul.mubr.f32.vlgmr.msra.gmra.mrb[0].mxu1 %v2781_v5  ;;  %v2778_v8 = vmax.f32 %v2162_v57, 0.0  ;;  %v2777_v9 = vmax.f32 %v2164_v63, 0.0  ;;  %v2776_v10 = vmax.f32 %v2166_v61, 0.0  ;;  %v2775_v11 = vmax.f32 %v2168_v3, 0.0  ;;  %1756 = vmatpush3.bf16.msra.mxu0 %v1753_v34 }
 0x16c   :  { %2824 = vst [vmem:[#allocation10_spill] sm:$0xff] %v2181_v60  ;;  %2825 = vst [vmem:[#allocation11_spill] sm:$0xff] %v2185_v62  ;;  %1572 = vmatprep.mubr.f32.mxu1 %v2780_v52  ;;  %v2774_v12 = vmax.f32 %v2175_v54, 0.0  ;;  %v2773_v13 = vmax.f32 %v2177_v56, 0.0  ;;  %v2772_v14 = vmax.f32 %v2179_v58, 0.0  ;;  %v2771_v15 = vmax.f32 %v2181_v60, 0.0 }
 0x16d   :  { %2826 = vst [vmem:[#allocation12_spill] sm:$0xff] %v2187_v0  ;;  %2827 = vst [vmem:[#allocation13_spill] sm:$0xff] %v2189_v2  ;;  %v2770_v17 = vmax.f32 %v2185_v62, 0.0  ;;  %v2769_v18 = vmax.f32 %v2187_v0, 0.0  ;;  %v2768_v19 = vmax.f32 %v2189_v2, 0.0  ;;  %v2767_v20 = vmax.f32 %v2191_v4, 0.0 }
 0x16e   :  { %2828 = vst [vmem:[#allocation14_spill] sm:$0xff] %v2191_v4  ;;  %v1757_v37 = vpack.c.bf16 %v71_v36, %v70_v35  ;;  %v1761_v40 = vpack.c.bf16 %v73_v39, %v72_v38  ;;  %v1765_v42 = vpack.c.bf16 %v75_v16, %v74_v41  ;;  %v1769_v44 = vpack.c.bf16 %v77_v7, %v76_v45 }
 0x16f   :  { %1573 = vmatmul.mubr.f32.gmra.mrb[2].mxu1 %v2779_v6 }
 0x170   :  { %1575 = vmatprep.mubr.f32.mxu1 %v2778_v8  ;;  %1758 = vmatprep.subr.bf16.mxu0 %v1757_v37 }
 0x171   :  { %1760 = vmatpush3.bf16.msra.mxu0 %v1757_v37 }
 0x172   :  { %1762 = vmatprep.subr.bf16.mxu0 %v1761_v40 }
 0x173   :  { %1576 = vmatmul.mubr.f32.gmra.mrb[4].mxu1 %v2777_v9 }
 0x174   :  { %1578 = vmatprep.mubr.f32.mxu1 %v2776_v10 }
 0x175   :  { %1764 = vmatpush3.bf16.msra.mxu0 %v1761_v40 }
 0x176   :  { %1766 = vmatprep.subr.bf16.mxu0 %v1765_v42 }
 0x177   :  { %1579 = vmatmul.mubr.f32.gmra.mrb[6].mxu1 %v2775_v11 }
 0x178   :  { %1581 = vmatprep.mubr.f32.mxu1 %v2774_v12 }
 0x179   :  { %1768 = vmatpush3.bf16.msra.mxu0 %v1765_v42 }
 0x17a   :  { %1770 = vmatprep.subr.bf16.mxu0 %v1769_v44 }
 0x17b   :  { %1582 = vmatmul.mubr.f32.gmra.mrb[8].mxu1 %v2773_v13 }
 0x17c   :  { %1584 = vmatprep.mubr.f32.mxu1 %v2772_v14 }
 0x17d   :  { %1772 = vmatpush3.bf16.msra.mxu0 %v1769_v44 }
 0x17f   :  { %1585 = vmatmul.mubr.f32.gmra.mrb[10].mxu1 %v2771_v15 }
 0x180   :  { %1587 = vmatprep.mubr.f32.mxu1 %v2770_v17 }
 0x183   :  { %1588 = vmatmul.mubr.f32.gmra.mrb[12].mxu1 %v2769_v18 }
 0x184   :  { %1590 = vmatprep.mubr.f32.mxu1 %v2768_v19 }
 0x187   :  { %1591 = vmatmul.mubr.f32.gmra.mrb[14].mxu1 %v2767_v20 }
 0x23e   :  { %v2234_v43 = vpop.f32.mrb[0].mxu1 }
 0x23f   :  { %v2236_v47 = vpop.f32.mrb[1].mxu1 }
 0x240   :  { %v575_v46 = vadd.f32 %v2234_v43, %v2236_v47 }
 0x242   :  { %v2240_v48 = vpop.f32.mrb[2].mxu1 }
 0x243   :  { %v2242_v51 = vpop.f32.mrb[3].mxu1 }
 0x244   :  { %v576_v49 = vadd.f32 %v575_v46, %v2242_v51 }
 0x246   :  { %v2245_v21 = vpop.f32.mrb[4].mxu1  ;;  %v577_v22 = vadd.f32 %v2240_v48, %v576_v49 }
 0x247   :  { %v2248_v23 = vpop.f32.mrb[5].mxu1 }
 0x248   :  { %v578_v24 = vadd.f32 %v577_v22, %v2248_v23 }
 0x24a   :  { %v2251_v25 = vpop.f32.mrb[6].mxu1  ;;  %v579_v28 = vadd.f32 %v2245_v21, %v578_v24 }
 0x24b   :  { %v2254_v29 = vpop.f32.mrb[7].mxu1 }
 0x24c   :  { %v580_v30 = vadd.f32 %v579_v28, %v2254_v29 }
 0x24e   :  { %v2257_v31 = vpop.f32.mrb[8].mxu1  ;;  %v581_v32 = vadd.f32 %v2251_v25, %v580_v30 }
 0x24f   :  { %v2260_v33 = vpop.f32.mrb[9].mxu1 }
 0x250   :  { %v582_v34 = vadd.f32 %v581_v32, %v2260_v33 }
 0x252   :  { %v2263_v35 = vpop.f32.mrb[10].mxu1  ;;  %v583_v36 = vadd.f32 %v2257_v31, %v582_v34 }
 0x253   :  { %v2266_v37 = vpop.f32.mrb[11].mxu1 }
 0x254   :  { %v584_v38 = vadd.f32 %v583_v36, %v2266_v37 }
 0x256   :  { %v2269_v39 = vpop.f32.mrb[12].mxu1  ;;  %v585_v40 = vadd.f32 %v2263_v35, %v584_v38 }
 0x257   :  { %v2272_v41 = vpop.f32.mrb[13].mxu1 }
 0x258   :  { %v586_v16 = vadd.f32 %v585_v40, %v2272_v41 }
 0x25a   :  { %v2275_v42 = vpop.f32.mrb[14].mxu1  ;;  %v587_v45 = vadd.f32 %v2269_v39, %v586_v16 }
 0x25b   :  { %v2278_v7 = vpop.f32.mrb[15].mxu1 }
 0x25c   :  { %v588_v44 = vadd.f32 %v587_v45, %v2278_v7 }
 0x25e   :  { %v589_v46 = vadd.f32 %v2275_v42, %v588_v44 }
 0x260   :  { %v590_v49 = vrot.slane %v589_v46, 4 }
 0x262   :  { %v591_v22 = vadd.f32 %v590_v49, %v589_v46 }
 0x264   :  { %v592_v24 = vrot.slane %v591_v22, 2 }
 0x266   :  { %v593_v28 = vadd.f32 %v592_v24, %v591_v22 }
 0x268   :  { %v594_v30 = vrot.slane %v593_v28, 1 }
 0x26a   :  { %v595_v32 = vadd.f32 %v594_v30, %v593_v28 }
 0x26c   :  { %v596_v34 = vmul.f32 0.0078125, %v595_v32 }
 0x26e   :  { %v597_v36 = vsub.f32 %v2236_v47, %v596_v34  ;;  %v598_v38 = vsub.f32 %v2234_v43, %v596_v34  ;;  %v599_v40 = vsub.f32 %v2242_v51, %v596_v34  ;;  %v600_v16 = vsub.f32 %v2240_v48, %v596_v34 }
 0x26f   :  { %v601_v20 = vsub.f32 %v2248_v23, %v596_v34  ;;  %v602_v45 = vsub.f32 %v2245_v21, %v596_v34  ;;  %v603_v44 = vsub.f32 %v2254_v29, %v596_v34  ;;  %v604_v46 = vsub.f32 %v2251_v25, %v596_v34 }
 0x270   :  { %v605_v49 = vsub.f32 %v2260_v33, %v596_v34  ;;  %v606_v22 = vsub.f32 %v2257_v31, %v596_v34  ;;  %v607_v24 = vsub.f32 %v2266_v37, %v596_v34  ;;  %v608_v28 = vsub.f32 %v2263_v35, %v596_v34 }
 0x271   :  { %v609_v30 = vsub.f32 %v2272_v41, %v596_v34  ;;  %v610_v32 = vsub.f32 %v2269_v39, %v596_v34  ;;  %v611_v19 = vsub.f32 %v2278_v7, %v596_v34  ;;  %v612_v18 = vsub.f32 %v2275_v42, %v596_v34 }
 0x272   :  { %v613_v17 = vmul.f32 %v597_v36, %v597_v36  ;;  %v614_v15 = vmul.f32 %v598_v38, %v598_v38  ;;  %v615_v14 = vmul.f32 %v599_v40, %v599_v40  ;;  %v616_v12 = vmul.f32 %v600_v16, %v600_v16 }
 0x273   :  { %v617_v10 = vmul.f32 %v601_v20, %v601_v20  ;;  %v618_v8 = vmul.f32 %v602_v45, %v602_v45  ;;  %v619_v52 = vmul.f32 %v603_v44, %v603_v44  ;;  %v620_v1 = vmul.f32 %v604_v46, %v604_v46 }
 0x274   :  { %v629_v13 = vadd.f32 %v614_v15, %v613_v17  ;;  %v621_v2 = vmul.f32 %v605_v49, %v605_v49  ;;  %v622_v62 = vmul.f32 %v606_v22, %v606_v22  ;;  %v623_v58 = vmul.f32 %v607_v24, %v607_v24 }
 0x275   :  { %v624_v36 = vmul.f32 %v608_v28, %v608_v28  ;;  %v625_v40 = vmul.f32 %v609_v30, %v609_v30  ;;  %v626_v17 = vmul.f32 %v610_v32, %v610_v32 }
 0x276   :  { %v630_v11 = vadd.f32 %v629_v13, %v615_v14  ;;  %v627_v14 = vmul.f32 %v611_v19, %v611_v19 }
 0x278   :  { %v631_v9 = vadd.f32 %v630_v11, %v616_v12  ;;  %v628_v12 = vmul.f32 %v612_v18, %v612_v18  ;;  %v681_v18 = vsub.s32 3, %v2129_v26 }
 0x27a   :  { %v632_v6 = vadd.f32 %v631_v9, %v617_v10 }
 0x27c   :  { %v633_v5 = vadd.f32 %v632_v6, %v618_v8 }
 0x27e   :  { %v634_v4 = vadd.f32 %v633_v5, %v619_v52 }
 0x280   :  { %v635_v0 = vadd.f32 %v634_v4, %v620_v1 }
 0x282   :  { %v636_v60 = vadd.f32 %v635_v0, %v621_v2 }
 0x284   :  { %v637_v56 = vadd.f32 %v636_v60, %v622_v62 }
 0x286   :  { %v638_v38 = vadd.f32 %v637_v56, %v623_v58  ;;  %v661_v56 = vsub.s32 2, %v2129_v26 }
 0x288   :  { %v639_v15 = vadd.f32 %v638_v38, %v624_v36 }
 0x28a   :  { %v640_v13 = vadd.f32 %v639_v15, %v625_v40 }
 0x28c   :  { %v641_v11 = vadd.f32 %v640_v13, %v626_v17 }
 0x28e   :  { %v642_v9 = vadd.f32 %v641_v11, %v627_v14 }
 0x290   :  { %v643_v10 = vadd.f32 %v642_v9, %v628_v12 }
 0x292   :  { %v644_v6 = vrot.slane %v643_v10, 4 }
 0x294   :  { %v645_v8 = vadd.f32 %v644_v6, %v643_v10 }
 0x296   :  { %v646_v5 = vrot.slane %v645_v8, 2 }
 0x298   :  { %v647_v52 = vadd.f32 %v646_v5, %v645_v8 }
 0x29a   :  { %v648_v1 = vrot.slane %v647_v52, 1 }
 0x29c   :  { %v649_v4 = vadd.f32 %v648_v1, %v647_v52 }
 0x29e   :  { %v650_v0 = vmul.f32 0.0078125, %v649_v4 }
 0x2a0   :  { %v651_v2 = vadd.f32 1e-05, %v650_v0 }
 0x2a2   :  { %1827 = vrsqrt.f32 %v651_v2 }
 0x2ac   :  { %v1828_v58 = vpop.eup %1827 }
 0x2ad   :  { %v653_v60 = vmul.f32 %v1828_v58, %v2131_v27 }
 0x2af   :  { %v654_v62 = vmul.f32 %v653_v60, %v596_v34  ;;  %v662_v19 = vrot.slane %v653_v60, %v661_v56 }
 0x2b1   :  { %v656_v20 = vrot.slane %v654_v62, 7  ;;  %v677_v16 = vmul.f32 %v662_v19, %v2278_v7  ;;  %v663_v45 = vmul.f32 %v662_v19, %v2236_v47  ;;  %v664_v44 = vmul.f32 %v2234_v43, %v662_v19 }
 0x2b2   :  { %v665_v46 = vmul.f32 %v662_v19, %v2242_v51  ;;  %v666_v49 = vmul.f32 %v2240_v48, %v662_v19  ;;  %v667_v22 = vmul.f32 %v662_v19, %v2248_v23  ;;  %v668_v24 = vmul.f32 %v2245_v21, %v662_v19 }
 0x2b3   :  { %v658_v34 = vsub.f32 %v2131_v27, %v656_v20  ;;  %v669_v28 = vmul.f32 %v662_v19, %v2254_v29  ;;  %v670_v30 = vmul.f32 %v2251_v25, %v662_v19  ;;  %v671_v7 = vmul.f32 %v662_v19, %v2260_v33 }
 0x2b4   :  { %v672_v47 = vmul.f32 %v2257_v31, %v662_v19  ;;  %v673_v43 = vmul.f32 %v662_v19, %v2266_v37  ;;  %v674_v51 = vmul.f32 %v2263_v35, %v662_v19  ;;  %v675_v48 = vmul.f32 %v662_v19, %v2272_v41 }
 0x2b5   :  { %v682_v32 = vrot.slane %v658_v34, %v681_v18  ;;  %v676_v23 = vmul.f32 %v2269_v39, %v662_v19  ;;  %v678_v21 = vmul.f32 %v2275_v42, %v662_v19  ;;  %v78_v19 = vld [vmem:[#allocation2 + $0x110] sm:$0xff]  ;;  %v79_v18 = vld [vmem:[#allocation2 + $0x118] sm:$0xff]  ;;  %v85_v34 = vld [vmem:[#allocation2 + $0x148] sm:$0xff] }
 0x2b6   :  { %v1773_v20 = vpack.c.bf16 %v79_v18, %v78_v19  ;;  %v92_v19 = vld [vmem:[#allocation2 + $0x180] sm:$0xff]  ;;  %v93_v18 = vld [vmem:[#allocation2 + $0x188] sm:$0xff] }
 0x2b7   :  { %v2318_v36 = vadd.f32 %v682_v32, %v663_v45  ;;  %v2320_v29 = vadd.f32 %v682_v32, %v664_v44  ;;  %v2322_v25 = vadd.f32 %v682_v32, %v665_v46  ;;  %v2324_v33 = vadd.f32 %v682_v32, %v666_v49  ;;  %v81_v45 = vld [vmem:[#allocation2 + $0x128] sm:$0xff]  ;;  %v82_v46 = vld [vmem:[#allocation2 + $0x130] sm:$0xff]  ;;  %v83_v49 = vld [vmem:[#allocation2 + $0x138] sm:$0xff] }
 0x2b8   :  { %v2326_v31 = vadd.f32 %v682_v32, %v667_v22  ;;  %v2328_v37 = vadd.f32 %v682_v32, %v668_v24  ;;  %v2330_v35 = vadd.f32 %v682_v32, %v669_v28  ;;  %v2332_v41 = vadd.f32 %v682_v32, %v670_v30  ;;  %1774 = vmatprep.subr.bf16.mxu0 %v1773_v20  ;;  %v84_v24 = vld [vmem:[#allocation2 + $0x140] sm:$0xff]  ;;  %v86_v30 = vld [vmem:[#allocation2 + $0x150] sm:$0xff] }
 0x2b9   :  { %v2805_v39 = vmax.f32 %v2318_v36, 0.0  ;;  %v2804_v42 = vmax.f32 %v2320_v29, 0.0  ;;  %v2803_v38 = vmax.f32 %v2322_v25, 0.0  ;;  %v2802_v40 = vmax.f32 %v2324_v33, 0.0  ;;  %1805 = vmatprep.subr.bf16.mxu1 %v1773_v20 }
 0x2ba   :  { %v2344_v15 = vadd.f32 %v682_v32, %v671_v7  ;;  %v2346_v17 = vadd.f32 %v682_v32, %v672_v47  ;;  %v2348_v13 = vadd.f32 %v682_v32, %v673_v43  ;;  %v2350_v14 = vadd.f32 %v682_v32, %v674_v51  ;;  %1813 = vmatpush3.bf16.msra.mxu1 %v1773_v20  ;;  %v87_v7 = vld [vmem:[#allocation2 + $0x158] sm:$0xff]  ;;  %v88_v43 = vld [vmem:[#allocation2 + $0x160] sm:$0xff]  ;;  %v89_v51 = vld [vmem:[#allocation2 + $0x168] sm:$0xff] }
 0x2bb   :  { %1625 = vmatprep.mubr.f32.mxu0 %v2805_v39  ;;  %v2352_v11 = vadd.f32 %v682_v32, %v675_v48  ;;  %v2354_v12 = vadd.f32 %v682_v32, %v676_v23  ;;  %v2356_v9 = vadd.f32 %v682_v32, %v677_v16  ;;  %v2358_v10 = vadd.f32 %v682_v32, %v678_v21  ;;  %v80_v16 = vld [vmem:[#allocation2 + $0x120] sm:$0xff]  ;;  %v90_v32 = vld [vmem:[#allocation2 + $0x170] sm:$0xff]  ;;  %v91_v23 = vld [vmem:[#allocation2 + $0x178] sm:$0xff] }
 0x2bc   :  { %1626 = vmatmul.mubr.f32.vlgmr.msra.gmra.mrb[16].mxu0 %v2804_v42  ;;  %2829 = vst [vmem:[#allocation15_spill] sm:$0xff] %v2350_v14  ;;  %v2801_v6 = vmax.f32 %v2326_v31, 0.0  ;;  %v2800_v8 = vmax.f32 %v2328_v37, 0.0  ;;  %v2799_v5 = vmax.f32 %v2330_v35, 0.0  ;;  %v2798_v52 = vmax.f32 %v2332_v41, 0.0 }
 0x2bd   :  { %1628 = vmatprep.mubr.f32.mxu0 %v2803_v38  ;;  %2830 = vst [vmem:[#allocation16_spill] sm:$0xff] %v2352_v11  ;;  %2831 = vst [vmem:[#allocation17_spill] sm:$0xff] %v2354_v12  ;;  %v2797_v1 = vmax.f32 %v2344_v15, 0.0  ;;  %v2796_v4 = vmax.f32 %v2346_v17, 0.0  ;;  %v2795_v0 = vmax.f32 %v2348_v13, 0.0  ;;  %v2794_v2 = vmax.f32 %v2350_v14, 0.0  ;;  %1776 = vmatpush3.bf16.msra.mxu0 %v1773_v20 }
 0x2be   :  { %2832 = vst [vmem:[#allocation18_spill] sm:$0xff] %v2356_v9  ;;  %2833 = vst [vmem:[#allocation19_spill] sm:$0xff] %v2358_v10  ;;  %v2793_v56 = vmax.f32 %v2352_v11, 0.0  ;;  %v2792_v58 = vmax.f32 %v2354_v12, 0.0  ;;  %v2791_v60 = vmax.f32 %v2356_v9, 0.0  ;;  %v2790_v62 = vmax.f32 %v2358_v10, 0.0 }
 0x2bf   :  { %v1777_v44 = vpack.c.bf16 %v81_v45, %v80_v16  ;;  %v1781_v22 = vpack.c.bf16 %v83_v49, %v82_v46  ;;  %v1785_v28 = vpack.c.bf16 %v85_v34, %v84_v24  ;;  %v1789_v47 = vpack.c.bf16 %v87_v7, %v86_v30 }
 0x2c0   :  { %1629 = vmatmul.mubr.f32.gmra.mrb[18].mxu0 %v2802_v40  ;;  %v1793_v48 = vpack.c.bf16 %v89_v51, %v88_v43  ;;  %v1797_v21 = vpack.c.bf16 %v91_v23, %v90_v32  ;;  %v1801_v20 = vpack.c.bf16 %v93_v18, %v92_v19 }
 0x2c1   :  { %1631 = vmatprep.mubr.f32.mxu0 %v2801_v6  ;;  %1778 = vmatprep.subr.bf16.mxu0 %v1777_v44 }
 0x2c2   :  { %1806 = vmatprep.subr.bf16.mxu1 %v1777_v44  ;;  %1780 = vmatpush3.bf16.msra.mxu0 %v1777_v44 }
 0x2c3   :  { %1814 = vmatpush3.bf16.msra.mxu1 %v1777_v44  ;;  %1782 = vmatprep.subr.bf16.mxu0 %v1781_v22 }
 0x2c4   :  { %1632 = vmatmul.mubr.f32.gmra.mrb[20].mxu0 %v2800_v8  ;;  %1807 = vmatprep.subr.bf16.mxu1 %v1781_v22 }
 0x2c5   :  { %1634 = vmatprep.mubr.f32.mxu0 %v2799_v5 }
 0x2c6   :  { %1784 = vmatpush3.bf16.msra.mxu0 %v1781_v22 }
 0x2c7   :  { %1815 = vmatpush3.bf16.msra.mxu1 %v1781_v22  ;;  %1786 = vmatprep.subr.bf16.mxu0 %v1785_v28 }
 0x2c8   :  { %1635 = vmatmul.mubr.f32.gmra.mrb[22].mxu0 %v2798_v52  ;;  %1808 = vmatprep.subr.bf16.mxu1 %v1785_v28 }
 0x2c9   :  { %1637 = vmatprep.mubr.f32.mxu0 %v2797_v1 }
 0x2ca   :  { %1788 = vmatpush3.bf16.msra.mxu0 %v1785_v28 }
 0x2cb   :  { %1816 = vmatpush3.bf16.msra.mxu1 %v1785_v28  ;;  %1790 = vmatprep.subr.bf16.mxu0 %v1789_v47 }
 0x2cc   :  { %1638 = vmatmul.mubr.f32.gmra.mrb[24].mxu0 %v2796_v4  ;;  %1809 = vmatprep.subr.bf16.mxu1 %v1789_v47 }
 0x2cd   :  { %1640 = vmatprep.mubr.f32.mxu0 %v2795_v0 }
 0x2ce   :  { %1792 = vmatpush3.bf16.msra.mxu0 %v1789_v47 }
 0x2cf   :  { %1817 = vmatpush3.bf16.msra.mxu1 %v1789_v47  ;;  %1794 = vmatprep.subr.bf16.mxu0 %v1793_v48 }
 0x2d0   :  { %1641 = vmatmul.mubr.f32.gmra.mrb[26].mxu0 %v2794_v2  ;;  %1810 = vmatprep.subr.bf16.mxu1 %v1793_v48 }
 0x2d1   :  { %1643 = vmatprep.mubr.f32.mxu0 %v2793_v56 }
 0x2d2   :  { %1796 = vmatpush3.bf16.msra.mxu0 %v1793_v48 }
 0x2d3   :  { %1818 = vmatpush3.bf16.msra.mxu1 %v1793_v48  ;;  %1798 = vmatprep.subr.bf16.mxu0 %v1797_v21 }
 0x2d4   :  { %1644 = vmatmul.mubr.f32.gmra.mrb[28].mxu0 %v2792_v58  ;;  %1811 = vmatprep.subr.bf16.mxu1 %v1797_v21 }
 0x2d5   :  { %1646 = vmatprep.mubr.f32.mxu0 %v2791_v60 }
 0x2d6   :  { %1800 = vmatpush3.bf16.msra.mxu0 %v1797_v21 }
 0x2d7   :  { %1819 = vmatpush3.bf16.msra.mxu1 %v1797_v21  ;;  %1802 = vmatprep.subr.bf16.mxu0 %v1801_v20 }
 0x2d8   :  { %1647 = vmatmul.mubr.f32.gmra.mrb[30].mxu0 %v2790_v62  ;;  %1812 = vmatprep.subr.bf16.mxu1 %v1801_v20 }
 0x2da   :  { %1804 = vmatpush3.bf16.msra.mxu0 %v1801_v20 }
 0x2db   :  { %1820 = vmatpush3.bf16.msra.mxu1 %v1801_v20 }
 0x38f   :  { %v2398_v16 = vpop.f32.mrb[16].mxu0 }
 0x390   :  { %v2400_v45 = vpop.f32.mrb[17].mxu0 }
 0x391   :  { %v860_v44 = vadd.f32 %v2398_v16, %v2400_v45 }
 0x393   :  { %v2404_v46 = vpop.f32.mrb[18].mxu0 }
 0x394   :  { %2834 = vst [vmem:[#allocation20_spill] sm:$0xff] %v2404_v46  ;;  %v2406_v49 = vpop.f32.mrb[19].mxu0 }
 0x395   :  { %2835 = vst [vmem:[#allocation21_spill] sm:$0xff] %v2406_v49  ;;  %v861_v22 = vadd.f32 %v860_v44, %v2406_v49 }
 0x397   :  { %v2409_v24 = vpop.f32.mrb[20].mxu0  ;;  %v862_v34 = vadd.f32 %v2404_v46, %v861_v22 }
 0x398   :  { %2836 = vst [vmem:[#allocation22_spill] sm:$0xff] %v2409_v24  ;;  %v2412_v28 = vpop.f32.mrb[21].mxu0 }
 0x399   :  { %2837 = vst [vmem:[#allocation23_spill] sm:$0xff] %v2412_v28  ;;  %v863_v30 = vadd.f32 %v862_v34, %v2412_v28 }
 0x39b   :  { %v2415_v7 = vpop.f32.mrb[22].mxu0  ;;  %v864_v47 = vadd.f32 %v2409_v24, %v863_v30 }
 0x39c   :  { %v2418_v43 = vpop.f32.mrb[23].mxu0 }
 0x39d   :  { %v865_v51 = vadd.f32 %v864_v47, %v2418_v43 }
 0x39f   :  { %v2421_v48 = vpop.f32.mrb[24].mxu0  ;;  %v866_v32 = vadd.f32 %v2415_v7, %v865_v51 }
 0x3a0   :  { %2838 = vst [vmem:[#allocation24_spill] sm:$0xff] %v2421_v48  ;;  %v2424_v23 = vpop.f32.mrb[25].mxu0 }
 0x3a1   :  { %2839 = vst [vmem:[#allocation25_spill] sm:$0xff] %v2424_v23  ;;  %v867_v21 = vadd.f32 %v866_v32, %v2424_v23 }
 0x3a3   :  { %v2427_v19 = vpop.f32.mrb[26].mxu0  ;;  %v868_v18 = vadd.f32 %v2421_v48, %v867_v21 }
 0x3a4   :  { %2840 = vst [vmem:[#allocation26_spill] sm:$0xff] %v2427_v19  ;;  %v2430_v20 = vpop.f32.mrb[27].mxu0 }
 0x3a5   :  { %2841 = vst [vmem:[#allocation27_spill] sm:$0xff] %v2430_v20  ;;  %v869_v44 = vadd.f32 %v868_v18, %v2430_v20 }
 0x3a7   :  { %v2433_v22 = vpop.f32.mrb[28].mxu0  ;;  %v870_v34 = vadd.f32 %v2427_v19, %v869_v44 }
 0x3a8   :  { %2842 = vst [vmem:[#allocation28_spill] sm:$0xff] %v2433_v22  ;;  %v2436_v30 = vpop.f32.mrb[29].mxu0 }
 0x3a9   :  { %2843 = vst [vmem:[#allocation29_spill] sm:$0xff] %v2436_v30  ;;  %v871_v47 = vadd.f32 %v870_v34, %v2436_v30 }
 0x3ab   :  { %v2439_v51 = vpop.f32.mrb[30].mxu0  ;;  %v872_v32 = vadd.f32 %v2433_v22, %v871_v47 }
 0x3ac   :  { %2844 = vst [vmem:[#allocation30_spill] sm:$0xff] %v2439_v51  ;;  %v2442_v62 = vpop.f32.mrb[31].mxu0 }
 0x3ad   :  { %v873_v21 = vadd.f32 %v872_v32, %v2442_v62 }
 0x3af   :  { %v874_v60 = vadd.f32 %v2439_v51, %v873_v21 }
 0x3b1   :  { %v875_v58 = vrot.slane %v874_v60, 4 }
 0x3b3   :  { %v876_v18 = vadd.f32 %v875_v58, %v874_v60 }
 0x3b5   :  { %v877_v56 = vrot.slane %v876_v18, 2 }
 0x3b7   :  { %v878_v2 = vadd.f32 %v877_v56, %v876_v18 }
 0x3b9   :  { %v879_v0 = vrot.slane %v878_v2, 1 }
 0x3bb   :  { %v880_v44 = vadd.f32 %v879_v0, %v878_v2 }
 0x3bd   :  { %v2446_v4 = vmul.f32 0.0078125, %v880_v44 }
 0x3bf   :  { %v882_v34 = vsub.f32 %v2400_v45, %v2446_v4  ;;  %v883_v47 = vsub.f32 %v2398_v16, %v2446_v4  ;;  %v884_v1 = vsub.f32 %v2406_v49, %v2446_v4  ;;  %v885_v32 = vsub.f32 %v2404_v46, %v2446_v4 }
 0x3c0   :  { %v886_v58 = vsub.f32 %v2412_v28, %v2446_v4  ;;  %v887_v0 = vsub.f32 %v2409_v24, %v2446_v4  ;;  %v888_v2 = vsub.f32 %v2418_v43, %v2446_v4  ;;  %v889_v56 = vsub.f32 %v2415_v7, %v2446_v4 }
 0x3c1   :  { %v890_v60 = vsub.f32 %v2424_v23, %v2446_v4  ;;  %v891_v21 = vsub.f32 %v2421_v48, %v2446_v4  ;;  %v892_v18 = vsub.f32 %v2430_v20, %v2446_v4  ;;  %v893_v44 = vsub.f32 %v2427_v19, %v2446_v4 }
 0x3c2   :  { %v894_v52 = vsub.f32 %v2436_v30, %v2446_v4  ;;  %v895_v5 = vsub.f32 %v2433_v22, %v2446_v4  ;;  %v896_v8 = vsub.f32 %v2442_v62, %v2446_v4  ;;  %v897_v6 = vsub.f32 %v2439_v51, %v2446_v4 }
 0x3c3   :  { %v898_v40 = vmul.f32 %v882_v34, %v882_v34  ;;  %v899_v38 = vmul.f32 %v883_v47, %v883_v47  ;;  %v900_v42 = vmul.f32 %v884_v1, %v884_v1  ;;  %v901_v10 = vmul.f32 %v885_v32, %v885_v32 }
 0x3c4   :  { %v902_v12 = vmul.f32 %v886_v58, %v886_v58  ;;  %v903_v14 = vmul.f32 %v887_v0, %v887_v0  ;;  %v904_v30 = vmul.f32 %v888_v2, %v888_v2  ;;  %v905_v20 = vmul.f32 %v889_v56, %v889_v56 }
 0x3c5   :  { %v914_v39 = vadd.f32 %v899_v38, %v898_v40  ;;  %v906_v28 = vmul.f32 %v890_v60, %v890_v60  ;;  %v907_v46 = vmul.f32 %v891_v21, %v891_v21  ;;  %v908_v49 = vmul.f32 %v892_v18, %v892_v18 }
 0x3c6   :  { %v909_v34 = vmul.f32 %v893_v44, %v893_v44  ;;  %v910_v1 = vmul.f32 %v894_v52, %v894_v52  ;;  %v911_v40 = vmul.f32 %v895_v5, %v895_v5  ;;  %v2845_v5 = vmax.f32 %v2154_v50, 0.0 }
 0x3c7   :  { %v915_v9 = vadd.f32 %v914_v39, %v900_v42  ;;  %v912_v42 = vmul.f32 %v896_v8, %v896_v8  ;;  %v2846_v8 = vmax.f32 %v2318_v36, 0.0  ;;  %v2849_v58 = vmax.f32 %v2158_v53, 0.0 }
 0x3c8   :  { %v2850_v0 = vmax.f32 %v2322_v25, 0.0  ;;  %v2851_v56 = vmax.f32 %v2160_v59, 0.0  ;;  %v2852_v60 = vmax.f32 %v2324_v33, 0.0  ;;  %v2853_v36 = vmax.f32 %v2162_v57, 0.0 }
 0x3c9   :  { %v916_v11 = vadd.f32 %v915_v9, %v901_v10  ;;  %v913_v10 = vmul.f32 %v897_v6, %v897_v6  ;;  %v2847_v6 = vmax.f32 %v2156_v55, 0.0  ;;  %v2854_v55 = vmax.f32 %v2326_v31, 0.0 }
 0x3ca   :  { %v1312_v2 = vadd.f32 %v2850_v0, %v2849_v58  ;;  %v2498_v50 = vadd.f32 %v2852_v60, %v2851_v56  ;;  %v2856_v18 = vmax.f32 %v2328_v37, 0.0  ;;  %v2857_v25 = vmax.f32 %v2166_v61, 0.0  ;;  %v2882_v56 = vld [vmem:[#allocation28_spill] sm:$0xff] }
 0x3cb   :  { %v917_v19 = vadd.f32 %v916_v11, %v902_v12  ;;  %v2504_v21 = vadd.f32 %v2854_v55, %v2853_v36  ;;  %v2858_v59 = vmax.f32 %v2330_v35, 0.0  ;;  %v2859_v33 = vmax.f32 %v2168_v3, 0.0  ;;  %v2866_v35 = vld [vmem:[#allocation9_spill] sm:$0xff]  ;;  %v2883_v36 = vld [vmem:[#allocation30_spill] sm:$0xff] }
 0x3cc   :  { %v2865_v61 = vmax.f32 %v2346_v17, 0.0  ;;  %v2868_v3 = vmax.f32 %v2348_v13, 0.0 }
 0x3cd   :  { %v918_v24 = vadd.f32 %v917_v19, %v903_v14  ;;  %v1316_v44 = vadd.f32 %v2858_v59, %v2857_v25  ;;  %v2886_v25 = vld [vmem:[#allocation16_spill] sm:$0xff] }
 0x3ce   :  { %v2887_v59 = vmax.f32 %v2886_v25, 0.0 }
 0x3cf   :  { %v919_v22 = vadd.f32 %v918_v24, %v904_v30 }
 0x3d1   :  { %v920_v48 = vadd.f32 %v919_v22, %v905_v20 }
 0x3d3   :  { %v921_v23 = vadd.f32 %v920_v48, %v906_v28 }
 0x3d5   :  { %v922_v51 = vadd.f32 %v921_v23, %v907_v46  ;;  %v946_v46 = vsub.s32 4, %v2129_v26  ;;  %v2848_v23 = vmax.f32 %v2320_v29, 0.0  ;;  %v2855_v29 = vmax.f32 %v2164_v63, 0.0 }
 0x3d6   :  { %v2862_v63 = vmax.f32 %v2344_v15, 0.0 }
 0x3d7   :  { %v923_v47 = vadd.f32 %v922_v51, %v908_v49  ;;  %v1310_v49 = vadd.f32 %v2846_v8, %v2845_v5  ;;  %v1311_v51 = vadd.f32 %v2848_v23, %v2847_v6  ;;  %v2510_v53 = vadd.f32 %v2856_v18, %v2855_v29  ;;  %v2876_v5 = vld [vmem:[#allocation26_spill] sm:$0xff]  ;;  %v2877_v8 = vld [vmem:[#allocation29_spill] sm:$0xff]  ;;  %v2884_v29 = vld [vmem:[#allocation11_spill] sm:$0xff] }
 0x3d8   :  { %v2878_v6 = vld [vmem:[#allocation10_spill] sm:$0xff]  ;;  %v2885_v18 = vmax.f32 %v2884_v29, 0.0 }
 0x3d9   :  { %v924_v38 = vadd.f32 %v923_v47, %v909_v34  ;;  %v2860_v34 = vmax.f32 %v2332_v41, 0.0  ;;  %v966_v41 = vsub.s32 5, %v2129_v26  ;;  %v2879_v23 = vmax.f32 %v2878_v6, 0.0 }
 0x3db   :  { %v925_v39 = vadd.f32 %v924_v38, %v910_v1  ;;  %v1317_v57 = vadd.f32 %v2860_v34, %v2859_v33  ;;  %v2861_v1 = vmax.f32 %v2175_v54, 0.0  ;;  %v2863_v38 = vld [vmem:[#allocation8_spill] sm:$0xff]  ;;  %v2565_v33 = vadd.f32 %v2887_v59, %v2885_v18 }
 0x3dc   :  { %v2888_v34 = vld [vmem:[#allocation12_spill] sm:$0xff] }
 0x3dd   :  { %v926_v9 = vadd.f32 %v925_v39, %v911_v40  ;;  %v1318_v37 = vadd.f32 %v2862_v63, %v2861_v1  ;;  %v2864_v40 = vmax.f32 %v2863_v38, 0.0  ;;  %v2890_v1 = vld [vmem:[#allocation17_spill] sm:$0xff] }
 0x3de   :  { %v2891_v63 = vmax.f32 %v2890_v1, 0.0 }
 0x3df   :  { %v927_v11 = vadd.f32 %v926_v9, %v912_v42  ;;  %v1319_v39 = vadd.f32 %v2865_v61, %v2864_v40  ;;  %v2867_v42 = vmax.f32 %v2866_v35, 0.0  ;;  %v2892_v40 = vld [vmem:[#allocation13_spill] sm:$0xff]  ;;  %v2894_v35 = vld [vmem:[#allocation18_spill] sm:$0xff] }
 0x3e0   :  { %v2893_v61 = vmax.f32 %v2892_v40, 0.0 }
 0x3e1   :  { %v928_v12 = vadd.f32 %v927_v11, %v913_v10  ;;  %v2533_v9 = vadd.f32 %v2868_v3, %v2867_v42  ;;  %v2895_v42 = vmax.f32 %v2894_v35, 0.0 }
 0x3e3   :  { %v929_v14 = vrot.slane %v928_v12, 4  ;;  %v2577_v3 = vadd.f32 %v2895_v42, %v2893_v61 }
 0x3e5   :  { %v930_v19 = vadd.f32 %v929_v14, %v928_v12  ;;  %v2869_v12 = vld [vmem:[#allocation21_spill] sm:$0xff] }
 0x3e7   :  { %v931_v24 = vrot.slane %v930_v19, 2 }
 0x3e9   :  { %v932_v30 = vadd.f32 %v931_v24, %v930_v19  ;;  %v2870_v19 = vld [vmem:[#allocation25_spill] sm:$0xff] }
 0x3eb   :  { %v933_v20 = vrot.slane %v932_v30, 1 }
 0x3ed   :  { %v934_v22 = vadd.f32 %v933_v20, %v932_v30  ;;  %v2871_v30 = vld [vmem:[#allocation20_spill] sm:$0xff] }
 0x3ef   :  { %v935_v28 = vmul.f32 0.0078125, %v934_v22  ;;  %v2872_v22 = vld [vmem:[#allocation24_spill] sm:$0xff] }
 0x3f1   :  { %v936_v48 = vadd.f32 1e-05, %v935_v28 }
 0x3f3   :  { %1829 = vrsqrt.f32 %v936_v48 }
 0x3fd   :  { %v1830_v52 = vpop.eup %1829 }
 0x3fe   :  { %v938_v32 = vmul.f32 %v1830_v52, %v2131_v27  ;;  %v2875_v52 = vld [vmem:[#allocation22_spill] sm:$0xff] }
 0x400   :  { %v939_v31 = vmul.f32 %v938_v32, %v2446_v4  ;;  %v947_v47 = vrot.slane %v938_v32, %v946_v46  ;;  %v2874_v46 = vld [vmem:[#allocation27_spill] sm:$0xff] }
 0x401   :  { %v2880_v32 = vld [vmem:[#allocation15_spill] sm:$0xff] }
 0x402   :  { %v941_v4 = vrot.slane %v939_v31, 7  ;;  %v2537_v10 = vmul.f32 %v947_v47, %v2442_v62  ;;  %v948_v54 = vmul.f32 %v947_v47, %v2400_v45  ;;  %v954_v15 = vmul.f32 %v947_v47, %v2418_v43  ;;  %v2873_v62 = vld [vmem:[#allocation23_spill] sm:$0xff] }
 0x403   :  { %v949_v11 = vmul.f32 %v2398_v16, %v947_v47  ;;  %v955_v17 = vmul.f32 %v2415_v7, %v947_v47  ;;  %v950_v14 = vmul.f32 %v947_v47, %v2869_v12  ;;  %v956_v13 = vmul.f32 %v947_v47, %v2870_v19 }
 0x404   :  { %v943_v24 = vsub.f32 %v2131_v27, %v941_v4  ;;  %v951_v20 = vmul.f32 %v2871_v30, %v947_v47  ;;  %v957_v28 = vmul.f32 %v2872_v22, %v947_v47  ;;  %v952_v48 = vmul.f32 %v947_v47, %v2873_v62  ;;  %v2898_v4 = vld [vmem:[#allocation19_spill] sm:$0xff] }
 0x405   :  { %v958_v45 = vmul.f32 %v947_v47, %v2874_v46  ;;  %v953_v43 = vmul.f32 %v2875_v52, %v947_v47  ;;  %v959_v16 = vmul.f32 %v2876_v5, %v947_v47  ;;  %v960_v7 = vmul.f32 %v947_v47, %v2877_v8 }
 0x406   :  { %v2881_v58 = vmax.f32 %v2880_v32, 0.0  ;;  %v967_v27 = vrot.slane %v943_v24, %v966_v41  ;;  %v961_v60 = vmul.f32 %v2882_v56, %v947_v47  ;;  %v963_v55 = vmul.f32 %v2883_v36, %v947_v47  ;;  %v2896_v41 = vld [vmem:[#allocation14_spill] sm:$0xff] }
 0x407   :  { %v2889_v31 = vmax.f32 %v2888_v34, 0.0  ;;  %v2897_v47 = vmax.f32 %v2896_v41, 0.0  ;;  %v2899_v12 = vmax.f32 %v2898_v4, 0.0 }
 0x408   :  { %v2557_v0 = vadd.f32 %v2881_v58, %v2879_v23  ;;  %v968_v24 = vadd.f32 %v967_v27, %v948_v54  ;;  %v974_v30 = vadd.f32 %v967_v27, %v954_v15  ;;  %v969_v22 = vadd.f32 %v967_v27, %v949_v11 }
 0x409   :  { %v2571_v38 = vadd.f32 %v2891_v63, %v2889_v31  ;;  %v2583_v19 = vadd.f32 %v2899_v12, %v2897_v47  ;;  %v975_v62 = vadd.f32 %v967_v27, %v955_v17  ;;  %v970_v46 = vadd.f32 %v967_v27, %v950_v14 }
 0x40a   :  { %v976_v52 = vadd.f32 %v967_v27, %v956_v13  ;;  %v971_v5 = vadd.f32 %v967_v27, %v951_v20  ;;  %v977_v8 = vadd.f32 %v967_v27, %v957_v28  ;;  %v984_v6 = vmax.f32 %v968_v24, 0.0 }
 0x40b   :  { %v990_v23 = vmax.f32 %v974_v30, 0.0  ;;  %v985_v32 = vmax.f32 %v969_v22, 0.0  ;;  %v991_v58 = vmax.f32 %v975_v62, 0.0  ;;  %v986_v56 = vmax.f32 %v970_v46, 0.0 }
 0x40c   :  { %v992_v36 = vmax.f32 %v976_v52, 0.0  ;;  %v987_v29 = vmax.f32 %v971_v5, 0.0  ;;  %v993_v18 = vmax.f32 %v977_v8, 0.0  ;;  %1681 = vmatprep.mubr.f32.mxu0 %v984_v6  ;;  %v1326_v25 = vadd.f32 %v1310_v49, %v984_v6 }
 0x40d   :  { %1690 = vmatprep.mubr.f32.mxu1 %v990_v23  ;;  %v1332_v59 = vadd.f32 %v1316_v44, %v990_v23  ;;  %v1327_v54 = vadd.f32 %v1311_v51, %v985_v32  ;;  %1682 = vmatmul.mubr.f32.vlgmr.msra.gmra.mrb[32].mxu0 %v985_v32  ;;  %v1333_v15 = vadd.f32 %v1317_v57, %v991_v58 }
 0x40e   :  { %1691 = vmatmul.mubr.f32.vlgmr.msra.gmra.mrb[16].mxu1 %v991_v58  ;;  %v1328_v11 = vadd.f32 %v1312_v2, %v986_v56  ;;  %v1334_v17 = vadd.f32 %v1318_v37, %v992_v36  ;;  %1342 = vst [vmem:[#allocation5] sm:$0xff] %v1326_v25  ;;  %1684 = vmatprep.mubr.f32.mxu0 %v986_v56 }
 0x40f   :  { %1348 = vst [vmem:[#allocation5 + $0x30] sm:$0xff] %v1332_v59  ;;  %1343 = vst [vmem:[#allocation5 + $0x8] sm:$0xff] %v1327_v54  ;;  %1693 = vmatprep.mubr.f32.mxu1 %v992_v36  ;;  %v1329_v14 = vadd.f32 %v2498_v50, %v987_v29  ;;  %v1335_v13 = vadd.f32 %v1319_v39, %v993_v18  ;;  %v972_v20 = vadd.f32 %v967_v27, %v952_v48 }
 0x410   :  { %1349 = vst [vmem:[#allocation5 + $0x38] sm:$0xff] %v1333_v15  ;;  %1344 = vst [vmem:[#allocation5 + $0x10] sm:$0xff] %v1328_v11  ;;  %v978_v49 = vadd.f32 %v967_v27, %v958_v45  ;;  %v973_v44 = vadd.f32 %v967_v27, %v953_v43  ;;  %v979_v51 = vadd.f32 %v967_v27, %v959_v16 }
 0x411   :  { %1350 = vst [vmem:[#allocation5 + $0x40] sm:$0xff] %v1334_v17  ;;  %v980_v28 = vadd.f32 %v967_v27, %v960_v7  ;;  %1345 = vst [vmem:[#allocation5 + $0x18] sm:$0xff] %v1329_v14  ;;  %v988_v2 = vmax.f32 %v972_v20, 0.0  ;;  %v981_v57 = vadd.f32 %v967_v27, %v961_v60  ;;  %v982_v37 = vadd.f32 %v967_v27, %v2537_v10 }
 0x412   :  { %1351 = vst [vmem:[#allocation5 + $0x48] sm:$0xff] %v1335_v13  ;;  %v983_v34 = vadd.f32 %v967_v27, %v963_v55  ;;  %1685 = vmatmul.mubr.f32.gmra.mrb[34].mxu0 %v987_v29  ;;  %1694 = vmatmul.mubr.f32.gmra.mrb[18].mxu1 %v993_v18  ;;  %v994_v31 = vmax.f32 %v978_v49, 0.0  ;;  %v989_v50 = vmax.f32 %v973_v44, 0.0  ;;  %v995_v39 = vmax.f32 %v979_v51, 0.0 }
 0x413   :  { %v996_v48 = vmax.f32 %v980_v28, 0.0  ;;  %1687 = vmatprep.mubr.f32.mxu0 %v988_v2  ;;  %v1330_v1 = vadd.f32 %v2504_v21, %v988_v2  ;;  %v997_v45 = vmax.f32 %v981_v57, 0.0  ;;  %v998_v43 = vmax.f32 %v982_v37, 0.0 }
 0x414   :  { %v999_v16 = vmax.f32 %v983_v34, 0.0  ;;  %1696 = vmatprep.mubr.f32.mxu1 %v994_v31  ;;  %v1336_v7 = vadd.f32 %v2533_v9, %v994_v31  ;;  %v1331_v60 = vadd.f32 %v2510_v53, %v989_v50  ;;  %v1337_v10 = vadd.f32 %v2557_v0, %v995_v39  ;;  %v1895_v53 = vld [vmem:[#allocation2 + $0x190] sm:$0xff] }
 0x415   :  { %v1338_v27 = vadd.f32 %v2565_v33, %v996_v48  ;;  %1346 = vst [vmem:[#allocation5 + $0x20] sm:$0xff] %v1330_v1  ;;  %v1339_v55 = vadd.f32 %v2571_v38, %v997_v45  ;;  %v1340_v63 = vadd.f32 %v2577_v3, %v998_v43  ;;  %v1002_v21 = vsub.s32 6, %v2129_v26 }
 0x416   :  { %v1341_v40 = vadd.f32 %v2583_v19, %v999_v16  ;;  %1352 = vst [vmem:[#allocation5 + $0x50] sm:$0xff] %v1336_v7  ;;  %1688 = vmatmul.mubr.f32.gmra.mrb[36].mxu0 %v989_v50  ;;  %1347 = vst [vmem:[#allocation5 + $0x28] sm:$0xff] %v1331_v60  ;;  %1697 = vmatmul.mubr.f32.gmra.mrb[20].mxu1 %v995_v39 }
 0x417   :  { %1353 = vst [vmem:[#allocation5 + $0x58] sm:$0xff] %v1337_v10  ;;  %1354 = vst [vmem:[#allocation5 + $0x60] sm:$0xff] %v1338_v27  ;;  %1699 = vmatprep.mubr.f32.mxu1 %v996_v48  ;;  %v1003_v9 = vrot.slane %v1895_v53, %v1002_v21 }
 0x418   :  { %1355 = vst [vmem:[#allocation5 + $0x68] sm:$0xff] %v1339_v55  ;;  %1356 = vst [vmem:[#allocation5 + $0x70] sm:$0xff] %v1340_v63 }
 0x419   :  { %1357 = vst [vmem:[#allocation5 + $0x78] sm:$0xff] %v1341_v40 }
 0x41a   :  { %1700 = vmatmul.mubr.f32.gmra.mrb[22].mxu1 %v997_v45 }
 0x41b   :  { %1702 = vmatprep.mubr.f32.mxu1 %v998_v43 }
 0x41e   :  { %1703 = vmatmul.mubr.f32.gmra.mrb[24].mxu1 %v999_v16 }
 0x4e0   :  { %v1683_v0 = vpop.f32.mrb[32].mxu0 }
 0x4e1   :  { %v1692_v33 = vpop.f32.mrb[16].mxu1  ;;  %v1076_v38 = vadd.f32 %v1683_v0, %v1003_v9  ;;  %v1070_v35 = vpop.f32.mrb[33].mxu0 }
 0x4e2   :  { %v1106_v61 = vadd.f32 %v1692_v33, %v1003_v9  ;;  %v1100_v42 = vpop.f32.mrb[17].mxu1  ;;  %v1071_v47 = vadd.f32 %v1070_v35, %v1003_v9 }
 0x4e3   :  { %1151 = vmax.xlane.f32.xlu0 %v1076_v38  ;;  %v1101_v30 = vadd.f32 %v1100_v42, %v1003_v9 }
 0x4e4   :  { %1163 = vmax.xlane.f32.xlu1 %v1106_v61 }
 0x4e5   :  { %v1686_v3 = vpop.f32.mrb[34].mxu0  ;;  %v1695_v41 = vpop.f32.mrb[18].mxu1 }
 0x4e6   :  { %v1086_v4 = vadd.f32 %v1686_v3, %v1003_v9  ;;  %v1080_v12 = vpop.f32.mrb[35].mxu0  ;;  %v1110_v19 = vpop.f32.mrb[19].mxu1  ;;  %v1116_v22 = vadd.f32 %v1695_v41, %v1003_v9 }
 0x4e7   :  { %1149 = vmax.xlane.f32.xlu0 %v1071_v47  ;;  %v1081_v5 = vadd.f32 %v1080_v12, %v1003_v9  ;;  %v1111_v8 = vadd.f32 %v1110_v19, %v1003_v9 }
 0x4e8   :  { %1155 = vmax.xlane.f32.xlu1 %v1086_v4 }
 0x4e9   :  { %v1689_v24 = vpop.f32.mrb[36].mxu0  ;;  %v1698_v26 = vpop.f32.mrb[20].mxu1 }
 0x4ea   :  { %v1090_v62 = vpop.f32.mrb[37].mxu0  ;;  %v1120_v46 = vpop.f32.mrb[21].mxu1  ;;  %v1096_v32 = vadd.f32 %v1689_v24, %v1003_v9  ;;  %v1126_v36 = vadd.f32 %v1698_v26, %v1003_v9 }
 0x4eb   :  { %1161 = vmax.xlane.f32.xlu0 %v1101_v30  ;;  %v2596_v58 = vadd.f32 %v1090_v62, %v1003_v9  ;;  %v2599_v29 = vadd.f32 %v1120_v46, %v1003_v9 }
 0x4ec   :  { %1167 = vmax.xlane.f32.xlu1 %v1116_v22 }
 0x4ed   :  { %v1701_v52 = vpop.f32.mrb[22].mxu1 }
 0x4ee   :  { %v1130_v6 = vpop.f32.mrb[23].mxu1  ;;  %v2602_v18 = vadd.f32 %v1701_v52, %v1003_v9 }
 0x4ef   :  { %1165 = vmax.xlane.f32.xlu0 %v1111_v8  ;;  %v2604_v25 = vadd.f32 %v1130_v6, %v1003_v9 }
 0x4f0   :  { %1153 = vmax.xlane.f32.xlu1 %v1081_v5 }
 0x4f1   :  { %v1704_v23 = vpop.f32.mrb[24].mxu1 }
 0x4f2   :  { %v1140_v56 = vpop.f32.mrb[25].mxu1  ;;  %v2608_v59 = vadd.f32 %v1704_v23, %v1003_v9 }
 0x4f3   :  { %1157 = vmax.xlane.f32.xlu0 %v2596_v58  ;;  %v2610_v54 = vadd.f32 %v1140_v56, %v1003_v9 }
 0x4f4   :  { %1159 = vmax.xlane.f32.xlu1 %v1096_v32 }
 0x4f7   :  { %1169 = vmax.xlane.f32.xlu0 %v2599_v29 }
 0x4f8   :  { %1171 = vmax.xlane.f32.xlu1 %v1126_v36 }
 0x4fb   :  { %1173 = vmax.xlane.f32.xlu0 %v2604_v25 }
 0x4fc   :  { %1175 = vmax.xlane.f32.xlu1 %v2602_v18 }
 0x4ff   :  { %1177 = vmax.xlane.f32.xlu0 %v2610_v54 }
 0x500   :  { %1179 = vmax.xlane.f32.xlu1 %v2608_v59 }
 0x570   :  { %v1152_v11 = vpop.xlane.xlu0 %1151 }
 0x571   :  { %v1164_v15 = vpop.xlane.xlu1 %1163  ;;  %v1182_v14 = vsub.f32 %v1076_v38, %v1152_v11 }
 0x572   :  { %v1188_v17 = vsub.f32 %v1106_v61, %v1164_v15 }
 0x573   :  { %v1199_v13 = vmul.f32 1.442695, %v1182_v14 }
 0x574   :  { %v1150_v49 = vpop.xlane.xlu0 %1149  ;;  %v1211_v44 = vmul.f32 1.442695, %v1188_v17 }
 0x575   :  { %v1156_v20 = vpop.xlane.xlu1 %1155  ;;  %v1181_v28 = vsub.f32 %v1071_v47, %v1150_v49  ;;  %1831 = vpow2.f32 %v1199_v13 }
 0x576   :  { %v1184_v51 = vsub.f32 %v1086_v4, %v1156_v20  ;;  %1833 = vpow2.f32 %v1211_v44 }
 0x577   :  { %v1197_v2 = vmul.f32 1.442695, %v1181_v28 }
 0x578   :  { %v1162_v37 = vpop.xlane.xlu0 %1161  ;;  %v1203_v34 = vmul.f32 1.442695, %v1184_v51 }
 0x579   :  { %v1168_v57 = vpop.xlane.xlu1 %1167  ;;  %v1187_v31 = vsub.f32 %v1101_v30, %v1162_v37  ;;  %1835 = vpow2.f32 %v1197_v2 }
 0x57a   :  { %v1190_v50 = vsub.f32 %v1116_v22, %v1168_v57  ;;  %1837 = vpow2.f32 %v1203_v34 }
 0x57b   :  { %v1209_v39 = vmul.f32 1.442695, %v1187_v31 }
 0x57c   :  { %v1166_v1 = vpop.xlane.xlu0 %1165  ;;  %v1215_v43 = vmul.f32 1.442695, %v1190_v50 }
 0x57d   :  { %v1154_v48 = vpop.xlane.xlu1 %1153  ;;  %1839 = vpow2.f32 %v1209_v39  ;;  %v1189_v16 = vsub.f32 %v1111_v8, %v1166_v1 }
 0x57e   :  { %v1183_v45 = vsub.f32 %v1081_v5, %v1154_v48 }
 0x57f   :  { %v2614_v60 = vpop.eup %1831  ;;  %v1213_v63 = vmul.f32 1.442695, %v1189_v16 }
 0x580   :  { %v1201_v7 = vmul.f32 1.442695, %v1183_v45  ;;  %v1158_v27 = vpop.xlane.xlu0 %1157  ;;  %1231 = vadd.xlane.f32.xlu1 %v2614_v60  ;;  %v2618_v21 = vpop.eup %1833 }
 0x581   :  { %v1160_v10 = vpop.xlane.xlu1 %1159  ;;  %v1185_v40 = vsub.f32 %v2596_v58, %v1158_v27 }
 0x582   :  { %1841 = vpow2.f32 %v1201_v7  ;;  %v1186_v55 = vsub.f32 %v1096_v32, %v1160_v10 }
 0x583   :  { %1843 = vpow2.f32 %v1215_v43  ;;  %v2620_v9 = vpop.eup %1835  ;;  %v1205_v61 = vmul.f32 1.442695, %v1185_v40 }
 0x584   :  { %v1207_v53 = vmul.f32 1.442695, %v1186_v55  ;;  %v1170_v33 = vpop.xlane.xlu0 %1169  ;;  %1243 = vadd.xlane.f32.xlu1 %v2618_v21  ;;  %1229 = vadd.xlane.f32.xlu0 %v2620_v9  ;;  %v2625_v42 = vpop.eup %1837 }
 0x585   :  { %v1172_v0 = vpop.xlane.xlu1 %1171  ;;  %v1191_v35 = vsub.f32 %v2599_v29, %v1170_v33 }
 0x586   :  { %1845 = vpow2.f32 %v1207_v53  ;;  %v1192_v38 = vsub.f32 %v1126_v36, %v1172_v0 }
 0x587   :  { %1847 = vpow2.f32 %v1213_v63  ;;  %v2627_v41 = vpop.eup %1839  ;;  %v1217_v19 = vmul.f32 1.442695, %v1191_v35 }
 0x588   :  { %v1219_v3 = vmul.f32 1.442695, %v1192_v38  ;;  %v1174_v4 = vpop.xlane.xlu0 %1173  ;;  %1235 = vadd.xlane.f32.xlu1 %v2625_v42  ;;  %1241 = vadd.xlane.f32.xlu0 %v2627_v41 }
 0x589   :  { %v1176_v47 = vpop.xlane.xlu1 %1175  ;;  %v1193_v24 = vsub.f32 %v2604_v25, %v1174_v4 }
 0x58a   :  { %1849 = vpow2.f32 %v1219_v3  ;;  %v1194_v12 = vsub.f32 %v2602_v18, %v1176_v47 }
 0x58b   :  { %1851 = vpow2.f32 %v1205_v61  ;;  %v1221_v5 = vmul.f32 1.442695, %v1193_v24 }
 0x58c   :  { %v2633_v26 = vpop.eup %1841  ;;  %v1223_v30 = vmul.f32 1.442695, %v1194_v12  ;;  %v1178_v46 = vpop.xlane.xlu0 %1177 }
 0x58d   :  { %v2635_v22 = vpop.eup %1843  ;;  %v1180_v62 = vpop.xlane.xlu1 %1179  ;;  %1233 = vadd.xlane.f32.xlu0 %v2633_v26  ;;  %v1195_v8 = vsub.f32 %v2610_v54, %v1178_v46 }
 0x58e   :  { %1853 = vpow2.f32 %v1223_v30  ;;  %1247 = vadd.xlane.f32.xlu1 %v2635_v22  ;;  %v1196_v52 = vsub.f32 %v2608_v59, %v1180_v62 }
 0x58f   :  { %1855 = vpow2.f32 %v1217_v19  ;;  %v1225_v58 = vmul.f32 1.442695, %v1195_v8 }
 0x590   :  { %v2641_v6 = vpop.eup %1845  ;;  %v1227_v23 = vmul.f32 1.442695, %v1196_v52 }
 0x591   :  { %v2643_v32 = vpop.eup %1847 }
 0x592   :  { %1857 = vpow2.f32 %v1227_v23  ;;  %1239 = vadd.xlane.f32.xlu1 %v2641_v6  ;;  %1245 = vadd.xlane.f32.xlu0 %v2643_v32 }
 0x593   :  { %1859 = vpow2.f32 %v1221_v5 }
 0x594   :  { %v2647_v56 = vpop.eup %1849  ;;  %1861 = vpow2.f32 %v1225_v58 }
 0x595   :  { %v2649_v36 = vpop.eup %1851 }
 0x596   :  { %1251 = vadd.xlane.f32.xlu1 %v2647_v56  ;;  %1237 = vadd.xlane.f32.xlu0 %v2649_v36 }
 0x598   :  { %v2653_v29 = vpop.eup %1853 }
 0x599   :  { %v2655_v18 = vpop.eup %1855 }
 0x59a   :  { %1255 = vadd.xlane.f32.xlu1 %v2653_v29  ;;  %1249 = vadd.xlane.f32.xlu0 %v2655_v18 }
 0x59c   :  { %v2659_v25 = vpop.eup %1857 }
 0x59d   :  { %v2661_v59 = vpop.eup %1859 }
 0x59e   :  { %1259 = vadd.xlane.f32.xlu1 %v2659_v25  ;;  %1253 = vadd.xlane.f32.xlu0 %v2661_v59  ;;  %v2665_v54 = vpop.eup %1861 }
 0x5a2   :  { %1257 = vadd.xlane.f32.xlu0 %v2665_v54 }
 0x5a3   :  { %1929 = shalt.err (!%p1926_p12)
}
 0x5a4   :  { %s1930_s8 = scalar_lea.hbm %s2766_s3, 2048 }
 0x5a5   :  { %p1931_p13 = scmp.ne.s32.totalorder %s2766_s3, %s1930_s8  ;;  %p1934_p0 = scmp.lt.u32.totalorder %s1930_s8, %s2766_s3 }
 0x5a7   :  { %p1936_p1 = pnand %p1934_p0, %p1931_p13 }
 0x5a9   :  { %1939 = shalt.err (!%p1936_p1)
}
 0x5aa   :  { %1371 = dma.vmem_to_hbm [thread:$0]  %s1366_s4, 2048, %s2766_s3, [#allocation4], %s1945_s22, %s1945_s22, %s1946_s23   ;;  %vm1293_vm1 = vcmask 39936  }
 0x60d   :  { %v1232_v15 = vpop.xlane.xlu1 %1231 }
 0x60e   :  { %1863 = vrcp.f32 %v1232_v15 }
 0x611   :  { %v1244_v11 = vpop.xlane.xlu1 %1243  ;;  %v1230_v17 = vpop.xlane.xlu0 %1229 }
 0x612   :  { %1865 = vrcp.f32 %v1244_v11 }
 0x613   :  { %1867 = vrcp.f32 %v1230_v17 }
 0x615   :  { %v1236_v14 = vpop.xlane.xlu1 %1235  ;;  %v1242_v13 = vpop.xlane.xlu0 %1241 }
 0x616   :  { %1869 = vrcp.f32 %v1236_v14 }
 0x617   :  { %1871 = vrcp.f32 %v1242_v13 }
 0x618   :  { %v1864_v20 = vpop.eup %1863 }
 0x619   :  { %v1278_v49 = vmul.f32 %v1864_v20, %v2614_v60 }
 0x61a   :  { %v1234_v51 = vpop.xlane.xlu0 %1233 }
 0x61b   :  { %v1248_v44 = vpop.xlane.xlu1 %1247  ;;  %1295 = vst.msk [vmem:[%s2765_s2 + $0x8] sm:$0xff] %vm1293_vm1, %v1278_v49 }
 0x61c   :  { %1873 = vrcp.f32 %v1248_v44  ;;  %v1866_v28 = vpop.eup %1865 }
 0x61d   :  { %1875 = vrcp.f32 %v1234_v51  ;;  %v1868_v2 = vpop.eup %1867  ;;  %v1284_v57 = vmul.f32 %v1866_v28, %v2618_v21 }
 0x61e   :  { %v1277_v31 = vmul.f32 %v1868_v2, %v2620_v9 }
 0x61f   :  { %v1240_v37 = vpop.xlane.xlu1 %1239  ;;  %v1246_v34 = vpop.xlane.xlu0 %1245  ;;  %1301 = vst.msk [vmem:[%s2765_s2 + $0x38] sm:$0xff] %vm1293_vm1, %v1284_v57 }
 0x620   :  { %1877 = vrcp.f32 %v1240_v37  ;;  %v1870_v50 = vpop.eup %1869  ;;  %1294 = vst.msk [vmem:[%s2765_s2] sm:$0xff] %vm1293_vm1, %v1277_v31 }
 0x621   :  { %1879 = vrcp.f32 %v1246_v34  ;;  %v1872_v39 = vpop.eup %1871  ;;  %v1280_v48 = vmul.f32 %v1870_v50, %v2625_v42 }
 0x622   :  { %v1283_v43 = vmul.f32 %v1872_v39, %v2627_v41 }
 0x623   :  { %v1252_v1 = vpop.xlane.xlu1 %1251  ;;  %v1238_v45 = vpop.xlane.xlu0 %1237  ;;  %1297 = vst.msk [vmem:[%s2765_s2 + $0x18] sm:$0xff] %vm1293_vm1, %v1280_v48 }
 0x624   :  { %1881 = vrcp.f32 %v1252_v1  ;;  %1300 = vst.msk [vmem:[%s2765_s2 + $0x30] sm:$0xff] %vm1293_vm1, %v1283_v43 }
 0x625   :  { %1883 = vrcp.f32 %v1238_v45 }
 0x626   :  { %v1874_v16 = vpop.eup %1873 }
 0x627   :  { %v1876_v7 = vpop.eup %1875  ;;  %v1286_v60 = vmul.f32 %v1874_v16, %v2635_v22  ;;  %v1256_v10 = vpop.xlane.xlu1 %1255 }
 0x628   :  { %v1250_v27 = vpop.xlane.xlu0 %1249  ;;  %v1279_v55 = vmul.f32 %v1876_v7, %v2633_v26  ;;  %1885 = vrcp.f32 %v1256_v10 }
 0x629   :  { %1303 = vst.msk [vmem:[%s2765_s2 + $0x48] sm:$0xff] %vm1293_vm1, %v1286_v60  ;;  %1887 = vrcp.f32 %v1250_v27 }
 0x62a   :  { %v1878_v63 = vpop.eup %1877  ;;  %1296 = vst.msk [vmem:[%s2765_s2 + $0x10] sm:$0xff] %vm1293_vm1, %v1279_v55 }
 0x62b   :  { %v1880_v40 = vpop.eup %1879  ;;  %v1282_v21 = vmul.f32 %v1878_v63, %v2641_v6  ;;  %v1260_v53 = vpop.xlane.xlu1 %1259 }
 0x62c   :  { %v1254_v9 = vpop.xlane.xlu0 %1253  ;;  %v1285_v0 = vmul.f32 %v1880_v40, %v2643_v32  ;;  %1889 = vrcp.f32 %v1260_v53 }
 0x62d   :  { %1299 = vst.msk [vmem:[%s2765_s2 + $0x28] sm:$0xff] %vm1293_vm1, %v1282_v21  ;;  %1891 = vrcp.f32 %v1254_v9 }
 0x62e   :  { %v1882_v33 = vpop.eup %1881  ;;  %1302 = vst.msk [vmem:[%s2765_s2 + $0x40] sm:$0xff] %vm1293_vm1, %v1285_v0 }
 0x62f   :  { %v1884_v38 = vpop.eup %1883  ;;  %v1288_v61 = vmul.f32 %v1882_v33, %v2647_v56 }
 0x630   :  { %v1258_v35 = vpop.xlane.xlu0 %1257  ;;  %v1281_v42 = vmul.f32 %v1884_v38, %v2649_v36 }
 0x631   :  { %1893 = vrcp.f32 %v1258_v35  ;;  %1305 = vst.msk [vmem:[%s2765_s2 + $0x58] sm:$0xff] %vm1293_vm1, %v1288_v61 }
 0x632   :  { %v1886_v3 = vpop.eup %1885  ;;  %1298 = vst.msk [vmem:[%s2765_s2 + $0x20] sm:$0xff] %vm1293_vm1, %v1281_v42 }
 0x633   :  { %v1888_v41 = vpop.eup %1887  ;;  %v1290_v47 = vmul.f32 %v1886_v3, %v2653_v29 }
 0x634   :  { %v1287_v4 = vmul.f32 %v1888_v41, %v2655_v18 }
 0x635   :  { %1307 = vst.msk [vmem:[%s2765_s2 + $0x68] sm:$0xff] %vm1293_vm1, %v1290_v47 }
 0x636   :  { %v1890_v12 = vpop.eup %1889  ;;  %1304 = vst.msk [vmem:[%s2765_s2 + $0x50] sm:$0xff] %vm1293_vm1, %v1287_v4 }
 0x637   :  { %v1892_v19 = vpop.eup %1891  ;;  %v1292_v24 = vmul.f32 %v1890_v12, %v2659_v25 }
 0x638   :  { %v1289_v26 = vmul.f32 %v1892_v19, %v2661_v59 }
 0x639   :  { %1309 = vst.msk [vmem:[%s2765_s2 + $0x78] sm:$0xff] %vm1293_vm1, %v1292_v24 }
 0x63a   :  { %1306 = vst.msk [vmem:[%s2765_s2 + $0x60] sm:$0xff] %vm1293_vm1, %v1289_v26 }
 0x63b   :  { %v1894_v30 = vpop.eup %1893 }
 0x63c   :  { %v1291_v22 = vmul.f32 %v1894_v30, %v2665_v54 }
 0x63e   :  { %1308 = vst.msk [vmem:[%s2765_s2 + $0x70] sm:$0xff] %vm1293_vm1, %v1291_v22 }
 0x63f   :  { %1942 = dma.done.wait [#allocation4], 2048  }
 0x640   :  { %1943 = vsyncadd [#allocation4], 4294965248 }
 0x641   :  { %1377 = vsyncpa [#allocation3], 1 }
 0x642   :  { %1378 = vsyncpa [#allocation4], 1 }

</bundles_post_ra>
